<compile_context>
chip_gen: v7x
topology: tpu7x:2x2x1
jax: 0.10.0
libtpu: 0.0.40
codegen_flags: <defaults>
</compile_context>

<pallas_src>
import jax
import jax.numpy as jnp
import numpy as np
from jax import lax
from jax.experimental import pallas as pl
from jax.experimental.pallas import tpu as pltpu

EPS = 1e-5  # PyTorch BatchNorm2d default eps


# --------------------------------------------------------------------------------------
# Kernel 1: fused DownConv+Tanh -> (VMEM) -> phase-decomposed ConvTranspose+Tanh + BN sums
# --------------------------------------------------------------------------------------
def _fused_down_up_kernel(xq_ref, wd_ref, wu_ref, z_ref, st_ref, ypad_ref):
    Hq = xq_ref.shape[2]            # Ho + 1
    Wq = xq_ref.shape[3]            # Wo + 1
    c_in = xq_ref.shape[4]
    inner = wd_ref.shape[2]
    c_up = wu_ref.shape[2]
    Ho, Wo = Hq - 1, Wq - 1
    M = Ho * Wo

    # ---- DownConv(4,2,1): 16 accumulated tap matmuls over shifted slices (in-kernel im2col) ----
    acc = None
    for dr in range(4):
        for dc in range(4):
            plane = (dr % 2) * 2 + (dc % 2)
            tap = xq_ref[0, plane, dr // 2:dr // 2 + Ho, dc // 2:dc // 2 + Wo, :]
            d = jnp.dot(tap.reshape(M, c_in), wd_ref[dr * 4 + dc],
                        preferred_element_type=jnp.float32)
            acc = d if acc is None else acc + d
    y = jnp.tanh(acc)                                        # (M, inner) — never hits HBM

    # ---- zero-padded down activation kept in VMEM scratch ----
    ypad_ref[...] = jnp.zeros_like(ypad_ref)
    ypad_ref[1:Ho + 1, 1:Wo + 1, :] = y.reshape(Ho, Wo, inner)

    # ---- ConvTranspose2d(4,2,1): 4 output phases x 4 non-zero taps, fused Tanh + BN sums ----
    s_acc = jnp.zeros((1, c_up), jnp.float32)
    q_acc = jnp.zeros((1, c_up), jnp.float32)
    for a in range(2):
        for b in range(2):
            accu = None
            for di in range(2):
                for dj in range(2):
                    t = ((a * 2 + b) * 2 + di) * 2 + dj
                    ytap = ypad_ref[a + di:a + di + Ho, b + dj:b + dj + Wo, :]
                    d = jnp.dot(ytap.reshape(M, inner), wu_ref[t],
                                preferred_element_type=jnp.float32)
                    accu = d if accu is None else accu + d
            zp = jnp.tanh(accu)                              # (M, c_up)
            z_ref[0, a * 2 + b, :, :] = zp
            s_acc = s_acc + jnp.sum(zp, axis=0, keepdims=True)
            q_acc = q_acc + jnp.sum(zp * zp, axis=0, keepdims=True)
    st_ref[0] = jnp.concatenate([s_acc, q_acc], axis=0)       # (2, c_up) per-image partial sums


def _fused_down_up(xq, wd_taps, wu_taps, N, Ho, Wo, c_in, inner, c_up):
    return pl.pallas_call(
        _fused_down_up_kernel,
        grid_spec=pltpu.PrefetchScalarGridSpec(
            num_scalar_prefetch=0,
            grid=(N,),
            in_specs=[
                pl.BlockSpec((1, 4, Ho + 1, Wo + 1, c_in), lambda n: (n, 0, 0, 0, 0)),
                pl.BlockSpec((16, c_in, inner), lambda n: (0, 0, 0)),
                pl.BlockSpec((16, inner, c_up), lambda n: (0, 0, 0)),
            ],
            out_specs=[
                pl.BlockSpec((1, 4, Ho * Wo, c_up), lambda n: (n, 0, 0, 0)),
                pl.BlockSpec((1, 2, c_up), lambda n: (n, 0, 0)),
            ],
            scratch_shapes=[pltpu.VMEM((Ho + 2, Wo + 2, inner), jnp.float32)],
        ),
        out_shape=(
            jax.ShapeDtypeStruct((N, 4, Ho * Wo, c_up), jnp.float32),
            jax.ShapeDtypeStruct((N, 2, c_up), jnp.float32),
        ),
        compiler_params=pltpu.CompilerParams(dimension_semantics=("parallel",)),
    )(xq, wd_taps, wu_taps)


# --------------------------------------------------------------------------------------
# Kernel 2: global BatchNorm affine + fused skip concat, lane-dense NCHW output
# --------------------------------------------------------------------------------------
def _bn_affine_concat_kernel(x_ref, z_ref, sc_ref, sh_ref, o_ref):
    xb = x_ref[0]                                   # (c_in, H*W)
    zn = z_ref[0] * sc_ref[...] + sh_ref[...]       # (c_up, H*W); (c_up,1) lane-broadcast
    o_ref[0] = jnp.concatenate([xb, zn], axis=0)    # skip-concat fused into one aligned store


def _bn_affine_concat(x_flat, z_int, scale, shift):
    N, c_in, HW = x_flat.shape
    c_up = z_int.shape[1]
    return pl.pallas_call(
        _bn_affine_concat_kernel,
        grid_spec=pltpu.PrefetchScalarGridSpec(
            num_scalar_prefetch=0,
            grid=(N,),
            in_specs=[
                pl.BlockSpec((1, c_in, HW), lambda n: (n, 0, 0)),
                pl.BlockSpec((1, c_up, HW), lambda n: (n, 0, 0)),
                pl.BlockSpec((c_up, 1), lambda n: (0, 0)),
                pl.BlockSpec((c_up, 1), lambda n: (0, 0)),
            ],
            out_specs=pl.BlockSpec((1, c_in + c_up, HW), lambda n: (n, 0, 0)),
        ),
        out_shape=jax.ShapeDtypeStruct((N, c_in + c_up, HW), jnp.float32),
        compiler_params=pltpu.CompilerParams(dimension_semantics=("parallel",)),
    )(x_flat, z_int, scale, shift)


# --------------------------------------------------------------------------------------
# Forward (wrapper glue is tiny: weight tap prep, quad split of x, phase interleave of z)
# --------------------------------------------------------------------------------------
@jax.jit
def unet_innermost_forward(x_nchw, w_down, w_up, gamma, beta):
    """x_nchw: (N, C_in, H, W); w_down: (inner_nc, C_in, 4, 4);
       w_up (ConvTranspose2d weight): (inner_nc, outer_nc, 4, 4); gamma/beta: (outer_nc,)."""
    N, c_in, H, W = x_nchw.shape
    inner = w_down.shape[0]
    c_up = w_up.shape[1]
    Ho, Wo = H // 2, W // 2
    f32 = jnp.float32
    x = x_nchw.astype(f32)
    # TODO(synk): cast activation/weight streams to bfloat16 (halves HBM bytes, bf16 MXU path)
    #             once a looser-than-f32 numerical contract vs the PyTorch module is acceptable.

    # parity-split ("quad") view of the zero-padded input: stride-2 conv taps become
    # contiguous slices inside the kernel (im2col never leaves VMEM).
    xp = jnp.pad(x, ((0, 0), (0, 0), (1, 1), (1, 1)))
    xq = xp.reshape(N, c_in, Ho + 1, 2, Wo + 1, 2)
    xq = xq.transpose(0, 3, 5, 2, 4, 1).reshape(N, 4, Ho + 1, Wo + 1, c_in)

    # per-tap weight matrices
    wd_taps = jnp.transpose(w_down.astype(f32), (2, 3, 1, 0)).reshape(16, c_in, inner)
    wu_flip = w_up.astype(f32)[:, :, ::-1, ::-1]
    wu_taps = wu_flip.reshape(inner, c_up, 2, 2, 2, 2).transpose(3, 5, 2, 4, 0, 1)
    wu_taps = wu_taps.reshape(16, inner, c_up)

    # kernel 1: fused down conv + tanh + phase-decomposed transposed conv + tanh + BN sums
    z_ph, st = _fused_down_up(xq, wd_taps, wu_taps, N, Ho, Wo, c_in, inner, c_up)

    # global BatchNorm2d statistics (training-mode batch stats, biased variance)
    cnt = float(N * H * W)
    s = jnp.sum(st[:, 0, :], axis=0)
    q = jnp.sum(st[:, 1, :], axis=0)
    mean = s / cnt
    var = q / cnt - mean * mean
    inv = lax.rsqrt(var + EPS)
    g = gamma.astype(f32)
    scale = (g * inv).reshape(c_up, 1)
    shift = (beta.astype(f32) - mean * g * inv).reshape(c_up, 1)

    # interleave the 4 transposed-conv output phases back to (N, C_out, H*W) (tiny glue)
    z_int = z_ph.reshape(N, 2, 2, Ho, Wo, c_up).transpose(0, 5, 3, 1, 4, 2)
    z_int = z_int.reshape(N, c_up, H * W)

    # kernel 2: BN affine + skip concat, written directly in NCHW (lane-dense H*W)
    x_flat = x.reshape(N, c_in, H * W)
    out = _bn_affine_concat(x_flat, z_int, scale, shift)
    return out.reshape(N, c_in + c_up, H, W)


# --------------------------------------------------------------------------------------
# Pure-JAX reference (for correctness check)
# --------------------------------------------------------------------------------------
def _reference(x_nchw, w_down, w_up, gamma, beta):
    x = jnp.transpose(x_nchw, (0, 2, 3, 1)).astype(jnp.float32)
    w_dn_hwio = jnp.transpose(w_down, (2, 3, 1, 0))
    y = jnp.tanh(lax.conv_general_dilated(
        x, w_dn_hwio, (2, 2), ((1, 1), (1, 1)),
        dimension_numbers=('NHWC', 'HWIO', 'NHWC')))
    w_up_hwio = jnp.transpose(w_up[:, :, ::-1, ::-1], (2, 3, 0, 1))
    z = jnp.tanh(lax.conv_general_dilated(
        y, w_up_hwio, (1, 1), ((2, 2), (2, 2)), lhs_dilation=(2, 2),
        dimension_numbers=('NHWC', 'HWIO', 'NHWC')))
    mean = jnp.mean(z, axis=(0, 1, 2), keepdims=True)
    var = jnp.mean((z - mean) ** 2, axis=(0, 1, 2), keepdims=True)
    z = (z - mean) * lax.rsqrt(var + EPS) * gamma.reshape(1, 1, 1, -1) + beta.reshape(1, 1, 1, -1)
    z = jnp.transpose(z, (0, 3, 1, 2))
    return jnp.concatenate([x_nchw.astype(jnp.float32), z], axis=1)


if __name__ == "__main__":
    # UnetSkipConnectionBlock(outer_nc=4, inner_nc=8, innermost=True, activation='tanh')
    N, outer_nc, inner_nc, H, W = 2, 4, 8, 16, 16
    input_nc = outer_nc  # input_nc=None -> input_nc = outer_nc

    key = jax.random.PRNGKey(0)
    k_x, k_wd, k_wu, k_g, k_b = jax.random.split(key, 5)
    x = jax.random.normal(k_x, (N, input_nc, H, W), dtype=jnp.float32)
    w_down = 0.1 * jax.random.normal(k_wd, (inner_nc, input_nc, 4, 4), dtype=jnp.float32)
    w_up = 0.1 * jax.random.normal(k_wu, (inner_nc, outer_nc, 4, 4), dtype=jnp.float32)
    gamma = 1.0 + 0.1 * jax.random.normal(k_g, (outer_nc,), dtype=jnp.float32)
    beta = 0.1 * jax.random.normal(k_b, (outer_nc,), dtype=jnp.float32)

    out = jax.block_until_ready(unet_innermost_forward(x, w_down, w_up, gamma, beta))
    assert out.shape == (N, input_nc + outer_nc, H, W), out.shape

    ref = jax.block_until_ready(_reference(x, w_down, w_up, gamma, beta))
    np.testing.assert_allclose(np.asarray(out), np.asarray(ref), rtol=5e-3, atol=5e-3)

    print("KERNEL_OK")
</pallas_src>

<mosaic_0001>
module attributes {stable_mosaic.version = 11 : i64} {
  func.func @_fused_down_up_kernel(%arg0: i32, %arg1: memref<1x4x9x9x4xf32, #tpu.memory_space<vmem>>, %arg2: memref<16x4x8xf32, #tpu.memory_space<vmem>>, %arg3: memref<16x8x4xf32, #tpu.memory_space<vmem>>, %arg4: memref<1x4x64x4xf32, #tpu.memory_space<vmem>>, %arg5: memref<1x2x4xf32, #tpu.memory_space<vmem>>, %arg6: memref<10x10x8xf32, #tpu.memory_space<vmem>>) attributes {dimension_semantics = [#tpu.dimension_semantics<parallel>], iteration_bounds = array<i64: 2>, scalar_prefetch = 0 : i64, scratch_operands = 1 : i64, tpu.core_type = #tpu.core_type<tc>, window_params = [{transform_indices = @transform_0, window_bounds = array<i64: 1, 4, 9, 9, 4>}, {pipeline_mode = #tpu.pipeline_mode<synchronous>, transform_indices = @transform_1, window_bounds = array<i64: 16, 4, 8>}, {pipeline_mode = #tpu.pipeline_mode<synchronous>, transform_indices = @transform_2, window_bounds = array<i64: 16, 8, 4>}, {transform_indices = @transform_3, window_bounds = array<i64: 1, 4, 64, 4>}, {transform_indices = @transform_4, window_bounds = array<i64: 1, 2, 4>}]} {
    %c0 = arith.constant 0 : index
    %c0_0 = arith.constant 0 : index
    %c0_1 = arith.constant 0 : index
    %c0_2 = arith.constant 0 : index
    %c0_3 = arith.constant 0 : index
    %0 = vector.load %arg1[%c0, %c0_0, %c0_1, %c0_2, %c0_3] : memref<1x4x9x9x4xf32, #tpu.memory_space<vmem>>, vector<1x1x8x8x4xf32>
    %1 = vector.shape_cast %0 : vector<1x1x8x8x4xf32> to vector<8x8x4xf32>
    %2 = vector.shape_cast %1 : vector<8x8x4xf32> to vector<64x4xf32>
    %c0_4 = arith.constant 0 : index
    %c0_5 = arith.constant 0 : index
    %c0_6 = arith.constant 0 : index
    %3 = vector.load %arg2[%c0_4, %c0_5, %c0_6] : memref<16x4x8xf32, #tpu.memory_space<vmem>>, vector<1x4x8xf32>
    %4 = vector.shape_cast %3 : vector<1x4x8xf32> to vector<4x8xf32>
    %cst = arith.constant dense<0.000000e+00> : vector<64x8xf32>
    %5 = tpu.matmul %2, %4, %cst {dimension_numbers = #tpu.dot_dimension_numbers<[1], [0], [0], [1], [0, 0, 1, 1], [], []>} : vector<64x4xf32>, vector<4x8xf32>, vector<64x8xf32> -> vector<64x8xf32>
    %c0_7 = arith.constant 0 : index
    %c1 = arith.constant 1 : index
    %c0_8 = arith.constant 0 : index
    %c0_9 = arith.constant 0 : index
    %c0_10 = arith.constant 0 : index
    %6 = vector.load %arg1[%c0_7, %c1, %c0_8, %c0_9, %c0_10] : memref<1x4x9x9x4xf32, #tpu.memory_space<vmem>>, vector<1x1x8x8x4xf32>
    %7 = vector.shape_cast %6 : vector<1x1x8x8x4xf32> to vector<8x8x4xf32>
    %8 = vector.shape_cast %7 : vector<8x8x4xf32> to vector<64x4xf32>
    %c1_11 = arith.constant 1 : index
    %c0_12 = arith.constant 0 : index
    %c0_13 = arith.constant 0 : index
    %9 = vector.load %arg2[%c1_11, %c0_12, %c0_13] : memref<16x4x8xf32, #tpu.memory_space<vmem>>, vector<1x4x8xf32>
    %10 = vector.shape_cast %9 : vector<1x4x8xf32> to vector<4x8xf32>
    %cst_14 = arith.constant dense<0.000000e+00> : vector<64x8xf32>
    %11 = tpu.matmul %8, %10, %cst_14 {dimension_numbers = #tpu.dot_dimension_numbers<[1], [0], [0], [1], [0, 0, 1, 1], [], []>} : vector<64x4xf32>, vector<4x8xf32>, vector<64x8xf32> -> vector<64x8xf32>
    %12 = arith.addf %5, %11 : vector<64x8xf32>
    %c0_15 = arith.constant 0 : index
    %c0_16 = arith.constant 0 : index
    %c0_17 = arith.constant 0 : index
    %c1_18 = arith.constant 1 : index
    %c0_19 = arith.constant 0 : index
    %13 = vector.load %arg1[%c0_15, %c0_16, %c0_17, %c1_18, %c0_19] : memref<1x4x9x9x4xf32, #tpu.memory_space<vmem>>, vector<1x1x8x8x4xf32>
    %14 = vector.shape_cast %13 : vector<1x1x8x8x4xf32> to vector<8x8x4xf32>
    %15 = vector.shape_cast %14 : vector<8x8x4xf32> to vector<64x4xf32>
    %c2 = arith.constant 2 : index
    %c0_20 = arith.constant 0 : index
    %c0_21 = arith.constant 0 : index
    %16 = vector.load %arg2[%c2, %c0_20, %c0_21] : memref<16x4x8xf32, #tpu.memory_space<vmem>>, vector<1x4x8xf32>
    %17 = vector.shape_cast %16 : vector<1x4x8xf32> to vector<4x8xf32>
    %cst_22 = arith.constant dense<0.000000e+00> : vector<64x8xf32>
    %18 = tpu.matmul %15, %17, %cst_22 {dimension_numbers = #tpu.dot_dimension_numbers<[1], [0], [0], [1], [0, 0, 1, 1], [], []>} : vector<64x4xf32>, vector<4x8xf32>, vector<64x8xf32> -> vector<64x8xf32>
    %19 = arith.addf %12, %18 : vector<64x8xf32>
    %c0_23 = arith.constant 0 : index
    %c1_24 = arith.constant 1 : index
    %c0_25 = arith.constant 0 : index
    %c1_26 = arith.constant 1 : index
    %c0_27 = arith.constant 0 : index
    %20 = vector.load %arg1[%c0_23, %c1_24, %c0_25, %c1_26, %c0_27] : memref<1x4x9x9x4xf32, #tpu.memory_space<vmem>>, vector<1x1x8x8x4xf32>
    %21 = vector.shape_cast %20 : vector<1x1x8x8x4xf32> to vector<8x8x4xf32>
    %22 = vector.shape_cast %21 : vector<8x8x4xf32> to vector<64x4xf32>
    %c3 = arith.constant 3 : index
    %c0_28 = arith.constant 0 : index
    %c0_29 = arith.constant 0 : index
    %23 = vector.load %arg2[%c3, %c0_28, %c0_29] : memref<16x4x8xf32, #tpu.memory_space<vmem>>, vector<1x4x8xf32>
    %24 = vector.shape_cast %23 : vector<1x4x8xf32> to vector<4x8xf32>
    %cst_30 = arith.constant dense<0.000000e+00> : vector<64x8xf32>
    %25 = tpu.matmul %22, %24, %cst_30 {dimension_numbers = #tpu.dot_dimension_numbers<[1], [0], [0], [1], [0, 0, 1, 1], [], []>} : vector<64x4xf32>, vector<4x8xf32>, vector<64x8xf32> -> vector<64x8xf32>
    %26 = arith.addf %19, %25 : vector<64x8xf32>
    %c0_31 = arith.constant 0 : index
    %c2_32 = arith.constant 2 : index
    %c0_33 = arith.constant 0 : index
    %c0_34 = arith.constant 0 : index
    %c0_35 = arith.constant 0 : index
    %27 = vector.load %arg1[%c0_31, %c2_32, %c0_33, %c0_34, %c0_35] : memref<1x4x9x9x4xf32, #tpu.memory_space<vmem>>, vector<1x1x8x8x4xf32>
    %28 = vector.shape_cast %27 : vector<1x1x8x8x4xf32> to vector<8x8x4xf32>
    %29 = vector.shape_cast %28 : vector<8x8x4xf32> to vector<64x4xf32>
    %c4 = arith.constant 4 : index
    %c0_36 = arith.constant 0 : index
    %c0_37 = arith.constant 0 : index
    %30 = vector.load %arg2[%c4, %c0_36, %c0_37] : memref<16x4x8xf32, #tpu.memory_space<vmem>>, vector<1x4x8xf32>
    %31 = vector.shape_cast %30 : vector<1x4x8xf32> to vector<4x8xf32>
    %cst_38 = arith.constant dense<0.000000e+00> : vector<64x8xf32>
    %32 = tpu.matmul %29, %31, %cst_38 {dimension_numbers = #tpu.dot_dimension_numbers<[1], [0], [0], [1], [0, 0, 1, 1], [], []>} : vector<64x4xf32>, vector<4x8xf32>, vector<64x8xf32> -> vector<64x8xf32>
    %33 = arith.addf %26, %32 : vector<64x8xf32>
    %c0_39 = arith.constant 0 : index
    %c3_40 = arith.constant 3 : index
    %c0_41 = arith.constant 0 : index
    %c0_42 = arith.constant 0 : index
    %c0_43 = arith.constant 0 : index
    %34 = vector.load %arg1[%c0_39, %c3_40, %c0_41, %c0_42, %c0_43] : memref<1x4x9x9x4xf32, #tpu.memory_space<vmem>>, vector<1x1x8x8x4xf32>
    %35 = vector.shape_cast %34 : vector<1x1x8x8x4xf32> to vector<8x8x4xf32>
    %36 = vector.shape_cast %35 : vector<8x8x4xf32> to vector<64x4xf32>
    %c5 = arith.constant 5 : index
    %c0_44 = arith.constant 0 : index
    %c0_45 = arith.constant 0 : index
    %37 = vector.load %arg2[%c5, %c0_44, %c0_45] : memref<16x4x8xf32, #tpu.memory_space<vmem>>, vector<1x4x8xf32>
    %38 = vector.shape_cast %37 : vector<1x4x8xf32> to vector<4x8xf32>
    %cst_46 = arith.constant dense<0.000000e+00> : vector<64x8xf32>
    %39 = tpu.matmul %36, %38, %cst_46 {dimension_numbers = #tpu.dot_dimension_numbers<[1], [0], [0], [1], [0, 0, 1, 1], [], []>} : vector<64x4xf32>, vector<4x8xf32>, vector<64x8xf32> -> vector<64x8xf32>
    %40 = arith.addf %33, %39 : vector<64x8xf32>
    %c0_47 = arith.constant 0 : index
    %c2_48 = arith.constant 2 : index
    %c0_49 = arith.constant 0 : index
    %c1_50 = arith.constant 1 : index
    %c0_51 = arith.constant 0 : index
    %41 = vector.load %arg1[%c0_47, %c2_48, %c0_49, %c1_50, %c0_51] : memref<1x4x9x9x4xf32, #tpu.memory_space<vmem>>, vector<1x1x8x8x4xf32>
    %42 = vector.shape_cast %41 : vector<1x1x8x8x4xf32> to vector<8x8x4xf32>
    %43 = vector.shape_cast %42 : vector<8x8x4xf32> to vector<64x4xf32>
    %c6 = arith.constant 6 : index
    %c0_52 = arith.constant 0 : index
    %c0_53 = arith.constant 0 : index
    %44 = vector.load %arg2[%c6, %c0_52, %c0_53] : memref<16x4x8xf32, #tpu.memory_space<vmem>>, vector<1x4x8xf32>
    %45 = vector.shape_cast %44 : vector<1x4x8xf32> to vector<4x8xf32>
    %cst_54 = arith.constant dense<0.000000e+00> : vector<64x8xf32>
    %46 = tpu.matmul %43, %45, %cst_54 {dimension_numbers = #tpu.dot_dimension_numbers<[1], [0], [0], [1], [0, 0, 1, 1], [], []>} : vector<64x4xf32>, vector<4x8xf32>, vector<64x8xf32> -> vector<64x8xf32>
    %47 = arith.addf %40, %46 : vector<64x8xf32>
    %c0_55 = arith.constant 0 : index
    %c3_56 = arith.constant 3 : index
    %c0_57 = arith.constant 0 : index
    %c1_58 = arith.constant 1 : index
    %c0_59 = arith.constant 0 : index
    %48 = vector.load %arg1[%c0_55, %c3_56, %c0_57, %c1_58, %c0_59] : memref<1x4x9x9x4xf32, #tpu.memory_space<vmem>>, vector<1x1x8x8x4xf32>
    %49 = vector.shape_cast %48 : vector<1x1x8x8x4xf32> to vector<8x8x4xf32>
    %50 = vector.shape_cast %49 : vector<8x8x4xf32> to vector<64x4xf32>
    %c7 = arith.constant 7 : index
    %c0_60 = arith.constant 0 : index
    %c0_61 = arith.constant 0 : index
    %51 = vector.load %arg2[%c7, %c0_60, %c0_61] : memref<16x4x8xf32, #tpu.memory_space<vmem>>, vector<1x4x8xf32>
    %52 = vector.shape_cast %51 : vector<1x4x8xf32> to vector<4x8xf32>
    %cst_62 = arith.constant dense<0.000000e+00> : vector<64x8xf32>
    %53 = tpu.matmul %50, %52, %cst_62 {dimension_numbers = #tpu.dot_dimension_numbers<[1], [0], [0], [1], [0, 0, 1, 1], [], []>} : vector<64x4xf32>, vector<4x8xf32>, vector<64x8xf32> -> vector<64x8xf32>
    %54 = arith.addf %47, %53 : vector<64x8xf32>
    %c0_63 = arith.constant 0 : index
    %c0_64 = arith.constant 0 : index
    %c1_65 = arith.constant 1 : index
    %c0_66 = arith.constant 0 : index
    %c0_67 = arith.constant 0 : index
    %55 = vector.load %arg1[%c0_63, %c0_64, %c1_65, %c0_66, %c0_67] : memref<1x4x9x9x4xf32, #tpu.memory_space<vmem>>, vector<1x1x8x8x4xf32>
    %56 = vector.shape_cast %55 : vector<1x1x8x8x4xf32> to vector<8x8x4xf32>
    %57 = vector.shape_cast %56 : vector<8x8x4xf32> to vector<64x4xf32>
    %c8 = arith.constant 8 : index
    %c0_68 = arith.constant 0 : index
    %c0_69 = arith.constant 0 : index
    %58 = vector.load %arg2[%c8, %c0_68, %c0_69] : memref<16x4x8xf32, #tpu.memory_space<vmem>>, vector<1x4x8xf32>
    %59 = vector.shape_cast %58 : vector<1x4x8xf32> to vector<4x8xf32>
    %cst_70 = arith.constant dense<0.000000e+00> : vector<64x8xf32>
    %60 = tpu.matmul %57, %59, %cst_70 {dimension_numbers = #tpu.dot_dimension_numbers<[1], [0], [0], [1], [0, 0, 1, 1], [], []>} : vector<64x4xf32>, vector<4x8xf32>, vector<64x8xf32> -> vector<64x8xf32>
    %61 = arith.addf %54, %60 : vector<64x8xf32>
    %c0_71 = arith.constant 0 : index
    %c1_72 = arith.constant 1 : index
    %c1_73 = arith.constant 1 : index
    %c0_74 = arith.constant 0 : index
    %c0_75 = arith.constant 0 : index
    %62 = vector.load %arg1[%c0_71, %c1_72, %c1_73, %c0_74, %c0_75] : memref<1x4x9x9x4xf32, #tpu.memory_space<vmem>>, vector<1x1x8x8x4xf32>
    %63 = vector.shape_cast %62 : vector<1x1x8x8x4xf32> to vector<8x8x4xf32>
    %64 = vector.shape_cast %63 : vector<8x8x4xf32> to vector<64x4xf32>
    %c9 = arith.constant 9 : index
    %c0_76 = arith.constant 0 : index
    %c0_77 = arith.constant 0 : index
    %65 = vector.load %arg2[%c9, %c0_76, %c0_77] : memref<16x4x8xf32, #tpu.memory_space<vmem>>, vector<1x4x8xf32>
    %66 = vector.shape_cast %65 : vector<1x4x8xf32> to vector<4x8xf32>
    %cst_78 = arith.constant dense<0.000000e+00> : vector<64x8xf32>
    %67 = tpu.matmul %64, %66, %cst_78 {dimension_numbers = #tpu.dot_dimension_numbers<[1], [0], [0], [1], [0, 0, 1, 1], [], []>} : vector<64x4xf32>, vector<4x8xf32>, vector<64x8xf32> -> vector<64x8xf32>
    %68 = arith.addf %61, %67 : vector<64x8xf32>
    %c0_79 = arith.constant 0 : index
    %c0_80 = arith.constant 0 : index
    %c1_81 = arith.constant 1 : index
    %c1_82 = arith.constant 1 : index
    %c0_83 = arith.constant 0 : index
    %69 = vector.load %arg1[%c0_79, %c0_80, %c1_81, %c1_82, %c0_83] : memref<1x4x9x9x4xf32, #tpu.memory_space<vmem>>, vector<1x1x8x8x4xf32>
    %70 = vector.shape_cast %69 : vector<1x1x8x8x4xf32> to vector<8x8x4xf32>
    %71 = vector.shape_cast %70 : vector<8x8x4xf32> to vector<64x4xf32>
    %c10 = arith.constant 10 : index
    %c0_84 = arith.constant 0 : index
    %c0_85 = arith.constant 0 : index
    %72 = vector.load %arg2[%c10, %c0_84, %c0_85] : memref<16x4x8xf32, #tpu.memory_space<vmem>>, vector<1x4x8xf32>
    %73 = vector.shape_cast %72 : vector<1x4x8xf32> to vector<4x8xf32>
    %cst_86 = arith.constant dense<0.000000e+00> : vector<64x8xf32>
    %74 = tpu.matmul %71, %73, %cst_86 {dimension_numbers = #tpu.dot_dimension_numbers<[1], [0], [0], [1], [0, 0, 1, 1], [], []>} : vector<64x4xf32>, vector<4x8xf32>, vector<64x8xf32> -> vector<64x8xf32>
    %75 = arith.addf %68, %74 : vector<64x8xf32>
    %c0_87 = arith.constant 0 : index
    %c1_88 = arith.constant 1 : index
    %c1_89 = arith.constant 1 : index
    %c1_90 = arith.constant 1 : index
    %c0_91 = arith.constant 0 : index
    %76 = vector.load %arg1[%c0_87, %c1_88, %c1_89, %c1_90, %c0_91] : memref<1x4x9x9x4xf32, #tpu.memory_space<vmem>>, vector<1x1x8x8x4xf32>
    %77 = vector.shape_cast %76 : vector<1x1x8x8x4xf32> to vector<8x8x4xf32>
    %78 = vector.shape_cast %77 : vector<8x8x4xf32> to vector<64x4xf32>
    %c11 = arith.constant 11 : index
    %c0_92 = arith.constant 0 : index
    %c0_93 = arith.constant 0 : index
    %79 = vector.load %arg2[%c11, %c0_92, %c0_93] : memref<16x4x8xf32, #tpu.memory_space<vmem>>, vector<1x4x8xf32>
    %80 = vector.shape_cast %79 : vector<1x4x8xf32> to vector<4x8xf32>
    %cst_94 = arith.constant dense<0.000000e+00> : vector<64x8xf32>
    %81 = tpu.matmul %78, %80, %cst_94 {dimension_numbers = #tpu.dot_dimension_numbers<[1], [0], [0], [1], [0, 0, 1, 1], [], []>} : vector<64x4xf32>, vector<4x8xf32>, vector<64x8xf32> -> vector<64x8xf32>
    %82 = arith.addf %75, %81 : vector<64x8xf32>
    %c0_95 = arith.constant 0 : index
    %c2_96 = arith.constant 2 : index
    %c1_97 = arith.constant 1 : index
    %c0_98 = arith.constant 0 : index
    %c0_99 = arith.constant 0 : index
    %83 = vector.load %arg1[%c0_95, %c2_96, %c1_97, %c0_98, %c0_99] : memref<1x4x9x9x4xf32, #tpu.memory_space<vmem>>, vector<1x1x8x8x4xf32>
    %84 = vector.shape_cast %83 : vector<1x1x8x8x4xf32> to vector<8x8x4xf32>
    %85 = vector.shape_cast %84 : vector<8x8x4xf32> to vector<64x4xf32>
    %c12 = arith.constant 12 : index
    %c0_100 = arith.constant 0 : index
    %c0_101 = arith.constant 0 : index
    %86 = vector.load %arg2[%c12, %c0_100, %c0_101] : memref<16x4x8xf32, #tpu.memory_space<vmem>>, vector<1x4x8xf32>
    %87 = vector.shape_cast %86 : vector<1x4x8xf32> to vector<4x8xf32>
    %cst_102 = arith.constant dense<0.000000e+00> : vector<64x8xf32>
    %88 = tpu.matmul %85, %87, %cst_102 {dimension_numbers = #tpu.dot_dimension_numbers<[1], [0], [0], [1], [0, 0, 1, 1], [], []>} : vector<64x4xf32>, vector<4x8xf32>, vector<64x8xf32> -> vector<64x8xf32>
    %89 = arith.addf %82, %88 : vector<64x8xf32>
    %c0_103 = arith.constant 0 : index
    %c3_104 = arith.constant 3 : index
    %c1_105 = arith.constant 1 : index
    %c0_106 = arith.constant 0 : index
    %c0_107 = arith.constant 0 : index
    %90 = vector.load %arg1[%c0_103, %c3_104, %c1_105, %c0_106, %c0_107] : memref<1x4x9x9x4xf32, #tpu.memory_space<vmem>>, vector<1x1x8x8x4xf32>
    %91 = vector.shape_cast %90 : vector<1x1x8x8x4xf32> to vector<8x8x4xf32>
    %92 = vector.shape_cast %91 : vector<8x8x4xf32> to vector<64x4xf32>
    %c13 = arith.constant 13 : index
    %c0_108 = arith.constant 0 : index
    %c0_109 = arith.constant 0 : index
    %93 = vector.load %arg2[%c13, %c0_108, %c0_109] : memref<16x4x8xf32, #tpu.memory_space<vmem>>, vector<1x4x8xf32>
    %94 = vector.shape_cast %93 : vector<1x4x8xf32> to vector<4x8xf32>
    %cst_110 = arith.constant dense<0.000000e+00> : vector<64x8xf32>
    %95 = tpu.matmul %92, %94, %cst_110 {dimension_numbers = #tpu.dot_dimension_numbers<[1], [0], [0], [1], [0, 0, 1, 1], [], []>} : vector<64x4xf32>, vector<4x8xf32>, vector<64x8xf32> -> vector<64x8xf32>
    %96 = arith.addf %89, %95 : vector<64x8xf32>
    %c0_111 = arith.constant 0 : index
    %c2_112 = arith.constant 2 : index
    %c1_113 = arith.constant 1 : index
    %c1_114 = arith.constant 1 : index
    %c0_115 = arith.constant 0 : index
    %97 = vector.load %arg1[%c0_111, %c2_112, %c1_113, %c1_114, %c0_115] : memref<1x4x9x9x4xf32, #tpu.memory_space<vmem>>, vector<1x1x8x8x4xf32>
    %98 = vector.shape_cast %97 : vector<1x1x8x8x4xf32> to vector<8x8x4xf32>
    %99 = vector.shape_cast %98 : vector<8x8x4xf32> to vector<64x4xf32>
    %c14 = arith.constant 14 : index
    %c0_116 = arith.constant 0 : index
    %c0_117 = arith.constant 0 : index
    %100 = vector.load %arg2[%c14, %c0_116, %c0_117] : memref<16x4x8xf32, #tpu.memory_space<vmem>>, vector<1x4x8xf32>
    %101 = vector.shape_cast %100 : vector<1x4x8xf32> to vector<4x8xf32>
    %cst_118 = arith.constant dense<0.000000e+00> : vector<64x8xf32>
    %102 = tpu.matmul %99, %101, %cst_118 {dimension_numbers = #tpu.dot_dimension_numbers<[1], [0], [0], [1], [0, 0, 1, 1], [], []>} : vector<64x4xf32>, vector<4x8xf32>, vector<64x8xf32> -> vector<64x8xf32>
    %103 = arith.addf %96, %102 : vector<64x8xf32>
    %c0_119 = arith.constant 0 : index
    %c3_120 = arith.constant 3 : index
    %c1_121 = arith.constant 1 : index
    %c1_122 = arith.constant 1 : index
    %c0_123 = arith.constant 0 : index
    %104 = vector.load %arg1[%c0_119, %c3_120, %c1_121, %c1_122, %c0_123] : memref<1x4x9x9x4xf32, #tpu.memory_space<vmem>>, vector<1x1x8x8x4xf32>
    %105 = vector.shape_cast %104 : vector<1x1x8x8x4xf32> to vector<8x8x4xf32>
    %106 = vector.shape_cast %105 : vector<8x8x4xf32> to vector<64x4xf32>
    %c15 = arith.constant 15 : index
    %c0_124 = arith.constant 0 : index
    %c0_125 = arith.constant 0 : index
    %107 = vector.load %arg2[%c15, %c0_124, %c0_125] : memref<16x4x8xf32, #tpu.memory_space<vmem>>, vector<1x4x8xf32>
    %108 = vector.shape_cast %107 : vector<1x4x8xf32> to vector<4x8xf32>
    %cst_126 = arith.constant dense<0.000000e+00> : vector<64x8xf32>
    %109 = tpu.matmul %106, %108, %cst_126 {dimension_numbers = #tpu.dot_dimension_numbers<[1], [0], [0], [1], [0, 0, 1, 1], [], []>} : vector<64x4xf32>, vector<4x8xf32>, vector<64x8xf32> -> vector<64x8xf32>
    %110 = arith.addf %103, %109 : vector<64x8xf32>
    %111 = math.tanh %110 : vector<64x8xf32>
    %cst_127 = arith.constant 0.000000e+00 : f32
    %112 = vector.broadcast %cst_127 : f32 to vector<10x10x8xf32>
    %c0_128 = arith.constant 0 : index
    %c0_129 = arith.constant 0 : index
    %c0_130 = arith.constant 0 : index
    %113 = vector.load %arg6[%c0_128, %c0_129, %c0_130] : memref<10x10x8xf32, #tpu.memory_space<vmem>>, vector<10x10x8xf32>
    tpu.vector_store %arg6[%c0_128, %c0_129, %c0_130], %112 {strides = array<i32>} : memref<10x10x8xf32, #tpu.memory_space<vmem>>, vector<10x10x8xf32>,
    %114 = vector.shape_cast %111 : vector<64x8xf32> to vector<8x8x8xf32>
    %c1_131 = arith.constant 1 : index
    %c1_132 = arith.constant 1 : index
    %c0_133 = arith.constant 0 : index
    %115 = vector.load %arg6[%c1_131, %c1_132, %c0_133] : memref<10x10x8xf32, #tpu.memory_space<vmem>>, vector<8x8x8xf32>
    tpu.vector_store %arg6[%c1_131, %c1_132, %c0_133], %114 {strides = array<i32>} : memref<10x10x8xf32, #tpu.memory_space<vmem>>, vector<8x8x8xf32>,
    %cst_134 = arith.constant 0.000000e+00 : f32
    %116 = vector.broadcast %cst_134 : f32 to vector<1x4xf32>
    %cst_135 = arith.constant 0.000000e+00 : f32
    %117 = vector.broadcast %cst_135 : f32 to vector<1x4xf32>
    %c0_136 = arith.constant 0 : index
    %c0_137 = arith.constant 0 : index
    %c0_138 = arith.constant 0 : index
    %118 = vector.load %arg6[%c0_136, %c0_137, %c0_138] : memref<10x10x8xf32, #tpu.memory_space<vmem>>, vector<8x8x8xf32>
    %119 = vector.shape_cast %118 : vector<8x8x8xf32> to vector<64x8xf32>
    %c0_139 = arith.constant 0 : index
    %c0_140 = arith.constant 0 : index
    %c0_141 = arith.constant 0 : index
    %120 = vector.load %arg3[%c0_139, %c0_140, %c0_141] : memref<16x8x4xf32, #tpu.memory_space<vmem>>, vector<1x8x4xf32>
    %121 = vector.shape_cast %120 : vector<1x8x4xf32> to vector<8x4xf32>
    %cst_142 = arith.constant dense<0.000000e+00> : vector<64x4xf32>
    %122 = tpu.matmul %119, %121, %cst_142 {dimension_numbers = #tpu.dot_dimension_numbers<[1], [0], [0], [1], [0, 0, 1, 1], [], []>} : vector<64x8xf32>, vector<8x4xf32>, vector<64x4xf32> -> vector<64x4xf32>
    %c0_143 = arith.constant 0 : index
    %c1_144 = arith.constant 1 : index
    %c0_145 = arith.constant 0 : index
    %123 = vector.load %arg6[%c0_143, %c1_144, %c0_145] : memref<10x10x8xf32, #tpu.memory_space<vmem>>, vector<8x8x8xf32>
    %124 = vector.shape_cast %123 : vector<8x8x8xf32> to vector<64x8xf32>
    %c1_146 = arith.constant 1 : index
    %c0_147 = arith.constant 0 : index
    %c0_148 = arith.constant 0 : index
    %125 = vector.load %arg3[%c1_146, %c0_147, %c0_148] : memref<16x8x4xf32, #tpu.memory_space<vmem>>, vector<1x8x4xf32>
    %126 = vector.shape_cast %125 : vector<1x8x4xf32> to vector<8x4xf32>
    %cst_149 = arith.constant dense<0.000000e+00> : vector<64x4xf32>
    %127 = tpu.matmul %124, %126, %cst_149 {dimension_numbers = #tpu.dot_dimension_numbers<[1], [0], [0], [1], [0, 0, 1, 1], [], []>} : vector<64x8xf32>, vector<8x4xf32>, vector<64x4xf32> -> vector<64x4xf32>
    %128 = arith.addf %122, %127 : vector<64x4xf32>
    %c1_150 = arith.constant 1 : index
    %c0_151 = arith.constant 0 : index
    %c0_152 = arith.constant 0 : index
    %129 = vector.load %arg6[%c1_150, %c0_151, %c0_152] : memref<10x10x8xf32, #tpu.memory_space<vmem>>, vector<8x8x8xf32>
    %130 = vector.shape_cast %129 : vector<8x8x8xf32> to vector<64x8xf32>
    %c2_153 = arith.constant 2 : index
    %c0_154 = arith.constant 0 : index
    %c0_155 = arith.constant 0 : index
    %131 = vector.load %arg3[%c2_153, %c0_154, %c0_155] : memref<16x8x4xf32, #tpu.memory_space<vmem>>, vector<1x8x4xf32>
    %132 = vector.shape_cast %131 : vector<1x8x4xf32> to vector<8x4xf32>
    %cst_156 = arith.constant dense<0.000000e+00> : vector<64x4xf32>
    %133 = tpu.matmul %130, %132, %cst_156 {dimension_numbers = #tpu.dot_dimension_numbers<[1], [0], [0], [1], [0, 0, 1, 1], [], []>} : vector<64x8xf32>, vector<8x4xf32>, vector<64x4xf32> -> vector<64x4xf32>
    %134 = arith.addf %128, %133 : vector<64x4xf32>
    %c1_157 = arith.constant 1 : index
    %c1_158 = arith.constant 1 : index
    %c0_159 = arith.constant 0 : index
    %135 = vector.load %arg6[%c1_157, %c1_158, %c0_159] : memref<10x10x8xf32, #tpu.memory_space<vmem>>, vector<8x8x8xf32>
    %136 = vector.shape_cast %135 : vector<8x8x8xf32> to vector<64x8xf32>
    %c3_160 = arith.constant 3 : index
    %c0_161 = arith.constant 0 : index
    %c0_162 = arith.constant 0 : index
    %137 = vector.load %arg3[%c3_160, %c0_161, %c0_162] : memref<16x8x4xf32, #tpu.memory_space<vmem>>, vector<1x8x4xf32>
    %138 = vector.shape_cast %137 : vector<1x8x4xf32> to vector<8x4xf32>
    %cst_163 = arith.constant dense<0.000000e+00> : vector<64x4xf32>
    %139 = tpu.matmul %136, %138, %cst_163 {dimension_numbers = #tpu.dot_dimension_numbers<[1], [0], [0], [1], [0, 0, 1, 1], [], []>} : vector<64x8xf32>, vector<8x4xf32>, vector<64x4xf32> -> vector<64x4xf32>
    %140 = arith.addf %134, %139 : vector<64x4xf32>
    %141 = math.tanh %140 : vector<64x4xf32>
    %c0_164 = arith.constant 0 : index
    %c0_165 = arith.constant 0 : index
    %c0_166 = arith.constant 0 : index
    %c0_167 = arith.constant 0 : index
    %142 = vector.load %arg4[%c0_164, %c0_165, %c0_166, %c0_167] : memref<1x4x64x4xf32, #tpu.memory_space<vmem>>, vector<1x1x64x4xf32>
    %143 = vector.shape_cast %142 : vector<1x1x64x4xf32> to vector<64x4xf32>
    %144 = vector.shape_cast %141 : vector<64x4xf32> to vector<1x1x64x4xf32>
    tpu.vector_store %arg4[%c0_164, %c0_165, %c0_166, %c0_167], %144 {strides = array<i32>} : memref<1x4x64x4xf32, #tpu.memory_space<vmem>>, vector<1x1x64x4xf32>,
    %cst_168 = arith.constant dense<0.000000e+00> : vector<4xf32>
    %145 = vector.multi_reduction <add>, %141, %cst_168 [0] : vector<64x4xf32> to vector<4xf32>
    %146 = vector.shape_cast %145 : vector<4xf32> to vector<1x4xf32>
    %147 = arith.addf %116, %146 : vector<1x4xf32>
    %148 = arith.mulf %141, %141 : vector<64x4xf32>
    %cst_169 = arith.constant dense<0.000000e+00> : vector<4xf32>
    %149 = vector.multi_reduction <add>, %148, %cst_169 [0] : vector<64x4xf32> to vector<4xf32>
    %150 = vector.shape_cast %149 : vector<4xf32> to vector<1x4xf32>
    %151 = arith.addf %117, %150 : vector<1x4xf32>
    %c0_170 = arith.constant 0 : index
    %c1_171 = arith.constant 1 : index
    %c0_172 = arith.constant 0 : index
    %152 = vector.load %arg6[%c0_170, %c1_171, %c0_172] : memref<10x10x8xf32, #tpu.memory_space<vmem>>, vector<8x8x8xf32>
    %153 = vector.shape_cast %152 : vector<8x8x8xf32> to vector<64x8xf32>
    %c4_173 = arith.constant 4 : index
    %c0_174 = arith.constant 0 : index
    %c0_175 = arith.constant 0 : index
    %154 = vector.load %arg3[%c4_173, %c0_174, %c0_175] : memref<16x8x4xf32, #tpu.memory_space<vmem>>, vector<1x8x4xf32>
    %155 = vector.shape_cast %154 : vector<1x8x4xf32> to vector<8x4xf32>
    %cst_176 = arith.constant dense<0.000000e+00> : vector<64x4xf32>
    %156 = tpu.matmul %153, %155, %cst_176 {dimension_numbers = #tpu.dot_dimension_numbers<[1], [0], [0], [1], [0, 0, 1, 1], [], []>} : vector<64x8xf32>, vector<8x4xf32>, vector<64x4xf32> -> vector<64x4xf32>
    %c0_177 = arith.constant 0 : index
    %c2_178 = arith.constant 2 : index
    %c0_179 = arith.constant 0 : index
    %157 = vector.load %arg6[%c0_177, %c2_178, %c0_179] : memref<10x10x8xf32, #tpu.memory_space<vmem>>, vector<8x8x8xf32>
    %158 = vector.shape_cast %157 : vector<8x8x8xf32> to vector<64x8xf32>
    %c5_180 = arith.constant 5 : index
    %c0_181 = arith.constant 0 : index
    %c0_182 = arith.constant 0 : index
    %159 = vector.load %arg3[%c5_180, %c0_181, %c0_182] : memref<16x8x4xf32, #tpu.memory_space<vmem>>, vector<1x8x4xf32>
    %160 = vector.shape_cast %159 : vector<1x8x4xf32> to vector<8x4xf32>
    %cst_183 = arith.constant dense<0.000000e+00> : vector<64x4xf32>
    %161 = tpu.matmul %158, %160, %cst_183 {dimension_numbers = #tpu.dot_dimension_numbers<[1], [0], [0], [1], [0, 0, 1, 1], [], []>} : vector<64x8xf32>, vector<8x4xf32>, vector<64x4xf32> -> vector<64x4xf32>
    %162 = arith.addf %156, %161 : vector<64x4xf32>
    %c1_184 = arith.constant 1 : index
    %c1_185 = arith.constant 1 : index
    %c0_186 = arith.constant 0 : index
    %163 = vector.load %arg6[%c1_184, %c1_185, %c0_186] : memref<10x10x8xf32, #tpu.memory_space<vmem>>, vector<8x8x8xf32>
    %164 = vector.shape_cast %163 : vector<8x8x8xf32> to vector<64x8xf32>
    %c6_187 = arith.constant 6 : index
    %c0_188 = arith.constant 0 : index
    %c0_189 = arith.constant 0 : index
    %165 = vector.load %arg3[%c6_187, %c0_188, %c0_189] : memref<16x8x4xf32, #tpu.memory_space<vmem>>, vector<1x8x4xf32>
    %166 = vector.shape_cast %165 : vector<1x8x4xf32> to vector<8x4xf32>
    %cst_190 = arith.constant dense<0.000000e+00> : vector<64x4xf32>
    %167 = tpu.matmul %164, %166, %cst_190 {dimension_numbers = #tpu.dot_dimension_numbers<[1], [0], [0], [1], [0, 0, 1, 1], [], []>} : vector<64x8xf32>, vector<8x4xf32>, vector<64x4xf32> -> vector<64x4xf32>
    %168 = arith.addf %162, %167 : vector<64x4xf32>
    %c1_191 = arith.constant 1 : index
    %c2_192 = arith.constant 2 : index
    %c0_193 = arith.constant 0 : index
    %169 = vector.load %arg6[%c1_191, %c2_192, %c0_193] : memref<10x10x8xf32, #tpu.memory_space<vmem>>, vector<8x8x8xf32>
    %170 = vector.shape_cast %169 : vector<8x8x8xf32> to vector<64x8xf32>
    %c7_194 = arith.constant 7 : index
    %c0_195 = arith.constant 0 : index
    %c0_196 = arith.constant 0 : index
    %171 = vector.load %arg3[%c7_194, %c0_195, %c0_196] : memref<16x8x4xf32, #tpu.memory_space<vmem>>, vector<1x8x4xf32>
    %172 = vector.shape_cast %171 : vector<1x8x4xf32> to vector<8x4xf32>
    %cst_197 = arith.constant dense<0.000000e+00> : vector<64x4xf32>
    %173 = tpu.matmul %170, %172, %cst_197 {dimension_numbers = #tpu.dot_dimension_numbers<[1], [0], [0], [1], [0, 0, 1, 1], [], []>} : vector<64x8xf32>, vector<8x4xf32>, vector<64x4xf32> -> vector<64x4xf32>
    %174 = arith.addf %168, %173 : vector<64x4xf32>
    %175 = math.tanh %174 : vector<64x4xf32>
    %c0_198 = arith.constant 0 : index
    %c1_199 = arith.constant 1 : index
    %c0_200 = arith.constant 0 : index
    %c0_201 = arith.constant 0 : index
    %176 = vector.load %arg4[%c0_198, %c1_199, %c0_200, %c0_201] : memref<1x4x64x4xf32, #tpu.memory_space<vmem>>, vector<1x1x64x4xf32>
    %177 = vector.shape_cast %176 : vector<1x1x64x4xf32> to vector<64x4xf32>
    %178 = vector.shape_cast %175 : vector<64x4xf32> to vector<1x1x64x4xf32>
    tpu.vector_store %arg4[%c0_198, %c1_199, %c0_200, %c0_201], %178 {strides = array<i32>} : memref<1x4x64x4xf32, #tpu.memory_space<vmem>>, vector<1x1x64x4xf32>,
    %cst_202 = arith.constant dense<0.000000e+00> : vector<4xf32>
    %179 = vector.multi_reduction <add>, %175, %cst_202 [0] : vector<64x4xf32> to vector<4xf32>
    %180 = vector.shape_cast %179 : vector<4xf32> to vector<1x4xf32>
    %181 = arith.addf %147, %180 : vector<1x4xf32>
    %182 = arith.mulf %175, %175 : vector<64x4xf32>
    %cst_203 = arith.constant dense<0.000000e+00> : vector<4xf32>
    %183 = vector.multi_reduction <add>, %182, %cst_203 [0] : vector<64x4xf32> to vector<4xf32>
    %184 = vector.shape_cast %183 : vector<4xf32> to vector<1x4xf32>
    %185 = arith.addf %151, %184 : vector<1x4xf32>
    %c1_204 = arith.constant 1 : index
    %c0_205 = arith.constant 0 : index
    %c0_206 = arith.constant 0 : index
    %186 = vector.load %arg6[%c1_204, %c0_205, %c0_206] : memref<10x10x8xf32, #tpu.memory_space<vmem>>, vector<8x8x8xf32>
    %187 = vector.shape_cast %186 : vector<8x8x8xf32> to vector<64x8xf32>
    %c8_207 = arith.constant 8 : index
    %c0_208 = arith.constant 0 : index
    %c0_209 = arith.constant 0 : index
    %188 = vector.load %arg3[%c8_207, %c0_208, %c0_209] : memref<16x8x4xf32, #tpu.memory_space<vmem>>, vector<1x8x4xf32>
    %189 = vector.shape_cast %188 : vector<1x8x4xf32> to vector<8x4xf32>
    %cst_210 = arith.constant dense<0.000000e+00> : vector<64x4xf32>
    %190 = tpu.matmul %187, %189, %cst_210 {dimension_numbers = #tpu.dot_dimension_numbers<[1], [0], [0], [1], [0, 0, 1, 1], [], []>} : vector<64x8xf32>, vector<8x4xf32>, vector<64x4xf32> -> vector<64x4xf32>
    %c1_211 = arith.constant 1 : index
    %c1_212 = arith.constant 1 : index
    %c0_213 = arith.constant 0 : index
    %191 = vector.load %arg6[%c1_211, %c1_212, %c0_213] : memref<10x10x8xf32, #tpu.memory_space<vmem>>, vector<8x8x8xf32>
    %192 = vector.shape_cast %191 : vector<8x8x8xf32> to vector<64x8xf32>
    %c9_214 = arith.constant 9 : index
    %c0_215 = arith.constant 0 : index
    %c0_216 = arith.constant 0 : index
    %193 = vector.load %arg3[%c9_214, %c0_215, %c0_216] : memref<16x8x4xf32, #tpu.memory_space<vmem>>, vector<1x8x4xf32>
    %194 = vector.shape_cast %193 : vector<1x8x4xf32> to vector<8x4xf32>
    %cst_217 = arith.constant dense<0.000000e+00> : vector<64x4xf32>
    %195 = tpu.matmul %192, %194, %cst_217 {dimension_numbers = #tpu.dot_dimension_numbers<[1], [0], [0], [1], [0, 0, 1, 1], [], []>} : vector<64x8xf32>, vector<8x4xf32>, vector<64x4xf32> -> vector<64x4xf32>
    %196 = arith.addf %190, %195 : vector<64x4xf32>
    %c2_218 = arith.constant 2 : index
    %c0_219 = arith.constant 0 : index
    %c0_220 = arith.constant 0 : index
    %197 = vector.load %arg6[%c2_218, %c0_219, %c0_220] : memref<10x10x8xf32, #tpu.memory_space<vmem>>, vector<8x8x8xf32>
    %198 = vector.shape_cast %197 : vector<8x8x8xf32> to vector<64x8xf32>
    %c10_221 = arith.constant 10 : index
    %c0_222 = arith.constant 0 : index
    %c0_223 = arith.constant 0 : index
    %199 = vector.load %arg3[%c10_221, %c0_222, %c0_223] : memref<16x8x4xf32, #tpu.memory_space<vmem>>, vector<1x8x4xf32>
    %200 = vector.shape_cast %199 : vector<1x8x4xf32> to vector<8x4xf32>
    %cst_224 = arith.constant dense<0.000000e+00> : vector<64x4xf32>
    %201 = tpu.matmul %198, %200, %cst_224 {dimension_numbers = #tpu.dot_dimension_numbers<[1], [0], [0], [1], [0, 0, 1, 1], [], []>} : vector<64x8xf32>, vector<8x4xf32>, vector<64x4xf32> -> vector<64x4xf32>
    %202 = arith.addf %196, %201 : vector<64x4xf32>
    %c2_225 = arith.constant 2 : index
    %c1_226 = arith.constant 1 : index
    %c0_227 = arith.constant 0 : index
    %203 = vector.load %arg6[%c2_225, %c1_226, %c0_227] : memref<10x10x8xf32, #tpu.memory_space<vmem>>, vector<8x8x8xf32>
    %204 = vector.shape_cast %203 : vector<8x8x8xf32> to vector<64x8xf32>
    %c11_228 = arith.constant 11 : index
    %c0_229 = arith.constant 0 : index
    %c0_230 = arith.constant 0 : index
    %205 = vector.load %arg3[%c11_228, %c0_229, %c0_230] : memref<16x8x4xf32, #tpu.memory_space<vmem>>, vector<1x8x4xf32>
    %206 = vector.shape_cast %205 : vector<1x8x4xf32> to vector<8x4xf32>
    %cst_231 = arith.constant dense<0.000000e+00> : vector<64x4xf32>
    %207 = tpu.matmul %204, %206, %cst_231 {dimension_numbers = #tpu.dot_dimension_numbers<[1], [0], [0], [1], [0, 0, 1, 1], [], []>} : vector<64x8xf32>, vector<8x4xf32>, vector<64x4xf32> -> vector<64x4xf32>
    %208 = arith.addf %202, %207 : vector<64x4xf32>
    %209 = math.tanh %208 : vector<64x4xf32>
    %c0_232 = arith.constant 0 : index
    %c2_233 = arith.constant 2 : index
    %c0_234 = arith.constant 0 : index
    %c0_235 = arith.constant 0 : index
    %210 = vector.load %arg4[%c0_232, %c2_233, %c0_234, %c0_235] : memref<1x4x64x4xf32, #tpu.memory_space<vmem>>, vector<1x1x64x4xf32>
    %211 = vector.shape_cast %210 : vector<1x1x64x4xf32> to vector<64x4xf32>
    %212 = vector.shape_cast %209 : vector<64x4xf32> to vector<1x1x64x4xf32>
    tpu.vector_store %arg4[%c0_232, %c2_233, %c0_234, %c0_235], %212 {strides = array<i32>} : memref<1x4x64x4xf32, #tpu.memory_space<vmem>>, vector<1x1x64x4xf32>,
    %cst_236 = arith.constant dense<0.000000e+00> : vector<4xf32>
    %213 = vector.multi_reduction <add>, %209, %cst_236 [0] : vector<64x4xf32> to vector<4xf32>
    %214 = vector.shape_cast %213 : vector<4xf32> to vector<1x4xf32>
    %215 = arith.addf %181, %214 : vector<1x4xf32>
    %216 = arith.mulf %209, %209 : vector<64x4xf32>
    %cst_237 = arith.constant dense<0.000000e+00> : vector<4xf32>
    %217 = vector.multi_reduction <add>, %216, %cst_237 [0] : vector<64x4xf32> to vector<4xf32>
    %218 = vector.shape_cast %217 : vector<4xf32> to vector<1x4xf32>
    %219 = arith.addf %185, %218 : vector<1x4xf32>
    %c1_238 = arith.constant 1 : index
    %c1_239 = arith.constant 1 : index
    %c0_240 = arith.constant 0 : index
    %220 = vector.load %arg6[%c1_238, %c1_239, %c0_240] : memref<10x10x8xf32, #tpu.memory_space<vmem>>, vector<8x8x8xf32>
    %221 = vector.shape_cast %220 : vector<8x8x8xf32> to vector<64x8xf32>
    %c12_241 = arith.constant 12 : index
    %c0_242 = arith.constant 0 : index
    %c0_243 = arith.constant 0 : index
    %222 = vector.load %arg3[%c12_241, %c0_242, %c0_243] : memref<16x8x4xf32, #tpu.memory_space<vmem>>, vector<1x8x4xf32>
    %223 = vector.shape_cast %222 : vector<1x8x4xf32> to vector<8x4xf32>
    %cst_244 = arith.constant dense<0.000000e+00> : vector<64x4xf32>
    %224 = tpu.matmul %221, %223, %cst_244 {dimension_numbers = #tpu.dot_dimension_numbers<[1], [0], [0], [1], [0, 0, 1, 1], [], []>} : vector<64x8xf32>, vector<8x4xf32>, vector<64x4xf32> -> vector<64x4xf32>
    %c1_245 = arith.constant 1 : index
    %c2_246 = arith.constant 2 : index
    %c0_247 = arith.constant 0 : index
    %225 = vector.load %arg6[%c1_245, %c2_246, %c0_247] : memref<10x10x8xf32, #tpu.memory_space<vmem>>, vector<8x8x8xf32>
    %226 = vector.shape_cast %225 : vector<8x8x8xf32> to vector<64x8xf32>
    %c13_248 = arith.constant 13 : index
    %c0_249 = arith.constant 0 : index
    %c0_250 = arith.constant 0 : index
    %227 = vector.load %arg3[%c13_248, %c0_249, %c0_250] : memref<16x8x4xf32, #tpu.memory_space<vmem>>, vector<1x8x4xf32>
    %228 = vector.shape_cast %227 : vector<1x8x4xf32> to vector<8x4xf32>
    %cst_251 = arith.constant dense<0.000000e+00> : vector<64x4xf32>
    %229 = tpu.matmul %226, %228, %cst_251 {dimension_numbers = #tpu.dot_dimension_numbers<[1], [0], [0], [1], [0, 0, 1, 1], [], []>} : vector<64x8xf32>, vector<8x4xf32>, vector<64x4xf32> -> vector<64x4xf32>
    %230 = arith.addf %224, %229 : vector<64x4xf32>
    %c2_252 = arith.constant 2 : index
    %c1_253 = arith.constant 1 : index
    %c0_254 = arith.constant 0 : index
    %231 = vector.load %arg6[%c2_252, %c1_253, %c0_254] : memref<10x10x8xf32, #tpu.memory_space<vmem>>, vector<8x8x8xf32>
    %232 = vector.shape_cast %231 : vector<8x8x8xf32> to vector<64x8xf32>
    %c14_255 = arith.constant 14 : index
    %c0_256 = arith.constant 0 : index
    %c0_257 = arith.constant 0 : index
    %233 = vector.load %arg3[%c14_255, %c0_256, %c0_257] : memref<16x8x4xf32, #tpu.memory_space<vmem>>, vector<1x8x4xf32>
    %234 = vector.shape_cast %233 : vector<1x8x4xf32> to vector<8x4xf32>
    %cst_258 = arith.constant dense<0.000000e+00> : vector<64x4xf32>
    %235 = tpu.matmul %232, %234, %cst_258 {dimension_numbers = #tpu.dot_dimension_numbers<[1], [0], [0], [1], [0, 0, 1, 1], [], []>} : vector<64x8xf32>, vector<8x4xf32>, vector<64x4xf32> -> vector<64x4xf32>
    %236 = arith.addf %230, %235 : vector<64x4xf32>
    %c2_259 = arith.constant 2 : index
    %c2_260 = arith.constant 2 : index
    %c0_261 = arith.constant 0 : index
    %237 = vector.load %arg6[%c2_259, %c2_260, %c0_261] : memref<10x10x8xf32, #tpu.memory_space<vmem>>, vector<8x8x8xf32>
    %238 = vector.shape_cast %237 : vector<8x8x8xf32> to vector<64x8xf32>
    %c15_262 = arith.constant 15 : index
    %c0_263 = arith.constant 0 : index
    %c0_264 = arith.constant 0 : index
    %239 = vector.load %arg3[%c15_262, %c0_263, %c0_264] : memref<16x8x4xf32, #tpu.memory_space<vmem>>, vector<1x8x4xf32>
    %240 = vector.shape_cast %239 : vector<1x8x4xf32> to vector<8x4xf32>
    %cst_265 = arith.constant dense<0.000000e+00> : vector<64x4xf32>
    %241 = tpu.matmul %238, %240, %cst_265 {dimension_numbers = #tpu.dot_dimension_numbers<[1], [0], [0], [1], [0, 0, 1, 1], [], []>} : vector<64x8xf32>, vector<8x4xf32>, vector<64x4xf32> -> vector<64x4xf32>
    %242 = arith.addf %236, %241 : vector<64x4xf32>
    %243 = math.tanh %242 : vector<64x4xf32>
    %c0_266 = arith.constant 0 : index
    %c3_267 = arith.constant 3 : index
    %c0_268 = arith.constant 0 : index
    %c0_269 = arith.constant 0 : index
    %244 = vector.load %arg4[%c0_266, %c3_267, %c0_268, %c0_269] : memref<1x4x64x4xf32, #tpu.memory_space<vmem>>, vector<1x1x64x4xf32>
    %245 = vector.shape_cast %244 : vector<1x1x64x4xf32> to vector<64x4xf32>
    %246 = vector.shape_cast %243 : vector<64x4xf32> to vector<1x1x64x4xf32>
    tpu.vector_store %arg4[%c0_266, %c3_267, %c0_268, %c0_269], %246 {strides = array<i32>} : memref<1x4x64x4xf32, #tpu.memory_space<vmem>>, vector<1x1x64x4xf32>,
    %cst_270 = arith.constant dense<0.000000e+00> : vector<4xf32>
    %247 = vector.multi_reduction <add>, %243, %cst_270 [0] : vector<64x4xf32> to vector<4xf32>
    %248 = vector.shape_cast %247 : vector<4xf32> to vector<1x4xf32>
    %249 = arith.addf %215, %248 : vector<1x4xf32>
    %250 = arith.mulf %243, %243 : vector<64x4xf32>
    %cst_271 = arith.constant dense<0.000000e+00> : vector<4xf32>
    %251 = vector.multi_reduction <add>, %250, %cst_271 [0] : vector<64x4xf32> to vector<4xf32>
    %252 = vector.shape_cast %251 : vector<4xf32> to vector<1x4xf32>
    %253 = arith.addf %219, %252 : vector<1x4xf32>
    %254 = tpu.concatenate %249, %253 in 0 : vector<1x4xf32>, vector<1x4xf32> -> vector<2x4xf32>
    %c0_272 = arith.constant 0 : index
    %c0_273 = arith.constant 0 : index
    %c0_274 = arith.constant 0 : index
    %255 = vector.load %arg5[%c0_272, %c0_273, %c0_274] : memref<1x2x4xf32, #tpu.memory_space<vmem>>, vector<1x2x4xf32>
    %256 = vector.shape_cast %255 : vector<1x2x4xf32> to vector<2x4xf32>
    %257 = vector.shape_cast %254 : vector<2x4xf32> to vector<1x2x4xf32>
    tpu.vector_store %arg5[%c0_272, %c0_273, %c0_274], %257 {strides = array<i32>} : memref<1x2x4xf32, #tpu.memory_space<vmem>>, vector<1x2x4xf32>,
    return
  }
  func.func @transform_0(%arg0: i32) -> (i32, i32, i32, i32, i32) {
    %c0_i32 = arith.constant 0 : i32
    %c0_i32_0 = arith.constant 0 : i32
    %c0_i32_1 = arith.constant 0 : i32
    %c0_i32_2 = arith.constant 0 : i32
    %c0_i32_3 = arith.constant 0 : i32
    return %arg0, %c0_i32, %c0_i32_0, %c0_i32_1, %c0_i32_2 : i32, i32, i32, i32, i32
  }
  func.func @transform_1(%arg0: i32) -> (i32, i32, i32) {
    %c0_i32 = arith.constant 0 : i32
    %c0_i32_0 = arith.constant 0 : i32
    %c0_i32_1 = arith.constant 0 : i32
    %c0_i32_2 = arith.constant 0 : i32
    return %c0_i32, %c0_i32_0, %c0_i32_1 : i32, i32, i32
  }
  func.func @transform_2(%arg0: i32) -> (i32, i32, i32) {
    %c0_i32 = arith.constant 0 : i32
    %c0_i32_0 = arith.constant 0 : i32
    %c0_i32_1 = arith.constant 0 : i32
    %c0_i32_2 = arith.constant 0 : i32
    return %c0_i32, %c0_i32_0, %c0_i32_1 : i32, i32, i32
  }
  func.func @transform_3(%arg0: i32) -> (i32, i32, i32, i32) {
    %c0_i32 = arith.constant 0 : i32
    %c0_i32_0 = arith.constant 0 : i32
    %c0_i32_1 = arith.constant 0 : i32
    %c0_i32_2 = arith.constant 0 : i32
    return %arg0, %c0_i32, %c0_i32_0, %c0_i32_1 : i32, i32, i32, i32
  }
  func.func @transform_4(%arg0: i32) -> (i32, i32, i32) {
    %c0_i32 = arith.constant 0 : i32
    %c0_i32_0 = arith.constant 0 : i32
    %c0_i32_1 = arith.constant 0 : i32
    return %arg0, %c0_i32, %c0_i32_0 : i32, i32, i32
  }
}

module attributes {stable_mosaic.version = 11 : i64} {
  func.func @_bn_affine_concat_kernel(%arg0: i32, %arg1: memref<1x4x256xf32, #tpu.memory_space<vmem>>, %arg2: memref<1x4x256xf32, #tpu.memory_space<vmem>>, %arg3: memref<4x1xf32, #tpu.memory_space<vmem>>, %arg4: memref<4x1xf32, #tpu.memory_space<vmem>>, %arg5: memref<1x8x256xf32, #tpu.memory_space<vmem>>) attributes {dimension_semantics = [#tpu.dimension_semantics<parallel>], iteration_bounds = array<i64: 2>, scalar_prefetch = 0 : i64, scratch_operands = 0 : i64, tpu.core_type = #tpu.core_type<tc>, window_params = [{transform_indices = @transform_0, window_bounds = array<i64: 1, 4, 256>}, {transform_indices = @transform_1, window_bounds = array<i64: 1, 4, 256>}, {pipeline_mode = #tpu.pipeline_mode<synchronous>, transform_indices = @transform_2, window_bounds = array<i64: 4, 1>}, {pipeline_mode = #tpu.pipeline_mode<synchronous>, transform_indices = @transform_3, window_bounds = array<i64: 4, 1>}, {transform_indices = @transform_4, window_bounds = array<i64: 1, 8, 256>}]} {
    %c0 = arith.constant 0 : index
    %c0_0 = arith.constant 0 : index
    %c0_1 = arith.constant 0 : index
    %0 = vector.load %arg1[%c0, %c0_0, %c0_1] : memref<1x4x256xf32, #tpu.memory_space<vmem>>, vector<1x4x256xf32>
    %1 = vector.shape_cast %0 : vector<1x4x256xf32> to vector<4x256xf32>
    %c0_2 = arith.constant 0 : index
    %c0_3 = arith.constant 0 : index
    %c0_4 = arith.constant 0 : index
    %2 = vector.load %arg2[%c0_2, %c0_3, %c0_4] : memref<1x4x256xf32, #tpu.memory_space<vmem>>, vector<1x4x256xf32>
    %3 = vector.shape_cast %2 : vector<1x4x256xf32> to vector<4x256xf32>
    %c0_5 = arith.constant 0 : index
    %c0_6 = arith.constant 0 : index
    %4 = vector.load %arg3[%c0_5, %c0_6] : memref<4x1xf32, #tpu.memory_space<vmem>>, vector<4x1xf32>
    %5 = vector.broadcast %4 : vector<4x1xf32> to vector<4x256xf32>
    %6 = arith.mulf %3, %5 : vector<4x256xf32>
    %c0_7 = arith.constant 0 : index
    %c0_8 = arith.constant 0 : index
    %7 = vector.load %arg4[%c0_7, %c0_8] : memref<4x1xf32, #tpu.memory_space<vmem>>, vector<4x1xf32>
    %8 = vector.broadcast %7 : vector<4x1xf32> to vector<4x256xf32>
    %9 = arith.addf %6, %8 : vector<4x256xf32>
    %10 = tpu.concatenate %1, %9 in 0 : vector<4x256xf32>, vector<4x256xf32> -> vector<8x256xf32>
    %c0_9 = arith.constant 0 : index
    %c0_10 = arith.constant 0 : index
    %c0_11 = arith.constant 0 : index
    %11 = vector.load %arg5[%c0_9, %c0_10, %c0_11] : memref<1x8x256xf32, #tpu.memory_space<vmem>>, vector<1x8x256xf32>
    %12 = vector.shape_cast %11 : vector<1x8x256xf32> to vector<8x256xf32>
    %13 = vector.shape_cast %10 : vector<8x256xf32> to vector<1x8x256xf32>
    tpu.vector_store %arg5[%c0_9, %c0_10, %c0_11], %13 {strides = array<i32>} : memref<1x8x256xf32, #tpu.memory_space<vmem>>, vector<1x8x256xf32>,
    return
  }
  func.func @transform_0(%arg0: i32) -> (i32, i32, i32) {
    %c0_i32 = arith.constant 0 : i32
    %c0_i32_0 = arith.constant 0 : i32
    %c0_i32_1 = arith.constant 0 : i32
    return %arg0, %c0_i32, %c0_i32_0 : i32, i32, i32
  }
  func.func @transform_1(%arg0: i32) -> (i32, i32, i32) {
    %c0_i32 = arith.constant 0 : i32
    %c0_i32_0 = arith.constant 0 : i32
    %c0_i32_1 = arith.constant 0 : i32
    return %arg0, %c0_i32, %c0_i32_0 : i32, i32, i32
  }
  func.func @transform_2(%arg0: i32) -> (i32, i32) {
    %c0_i32 = arith.constant 0 : i32
    %c0_i32_0 = arith.constant 0 : i32
    %c0_i32_1 = arith.constant 0 : i32
    return %c0_i32, %c0_i32_0 : i32, i32
  }
  func.func @transform_3(%arg0: i32) -> (i32, i32) {
    %c0_i32 = arith.constant 0 : i32
    %c0_i32_0 = arith.constant 0 : i32
    %c0_i32_1 = arith.constant 0 : i32
    return %c0_i32, %c0_i32_0 : i32, i32
  }
  func.func @transform_4(%arg0: i32) -> (i32, i32, i32) {
    %c0_i32 = arith.constant 0 : i32
    %c0_i32_0 = arith.constant 0 : i32
    %c0_i32_1 = arith.constant 0 : i32
    return %arg0, %c0_i32, %c0_i32_0 : i32, i32, i32
  }
}

</mosaic_0001>

<bundles_post_ra>
// kernel: unet_innermost_forward.3
= control target key start
LH: loop header
LB: loop body
LE: loop exit
PB: predicated region body
PF: predicated region fallthrough
CT: control target
= control target key end

     0   :  { %s389_s15 = smov 0   ;;  %s415_s0 = inlined_call_operand.vmem [shape: f32[2,4,256], index: 0, kind: input, shape index: {}]   ;;  %s416_s1 = inlined_call_operand.vmem [shape: f32[2,4,256], index: 1, kind: input, shape index: {}]   ;;  %s417_s2 = inlined_call_operand.vmem [shape: f32[4,1], index: 2, kind: input, shape index: {}]   ;;  %s418_s3 = inlined_call_operand.vmem [shape: f32[4,1], index: 3, kind: input, shape index: {}]   ;;  %s419_s4 = inlined_call_operand.vmem [shape: f32[2,8,256], index: 4, kind: output, shape index: {}]  }
   0x1 LB: > { %s326_s16 = sadd.s32 4294967295, %s360_s15   ;;  %p330_p0 = scmp.ge.s32.totalorder %s360_s15, 1  ;;  %s360_s15 = sphi %s389_s15, %s14_s15  }
   0x2   : > { %p172_p1 = scmp.lt.s32.totalorder %s360_s15, 3 }
   0x4   : > { %p173_p2 = pnand %p330_p0, %p172_p1 }
   0x5   : > { %v220_v0 = vld [vmem:[%s417_s2] sm:$0xf] (!%p173_p2)  ;;  %v362_v1 = vmov (!%p173_p2), 0   ;;  %p203_p3 = scmp.lt.s32.totalorder (!%p173_p2), %s326_s16, 1  ;;  %v363_v3 = vmov (!%p173_p2), 839922192   ;;  %v228_v5 = vlaneseq (!%p173_p2) }
   0x6   : > { %176 = sbr.rel (%p173_p2) target bundleno = 147 (0x93), region = 36  ;;  %352 = vset.pattern.permute.xlu0 (!%p173_p2), %v362_v1  ;;  %v234_v2 = vld [vmem:[%s418_s3] sm:$0xf] (!%p173_p2)  ;;  %v226_v4 = vunpack.c.l.s4 (!%p173_p2), %v363_v3  ;;  %vm254_vm0 = vcmask (!%p173_p2), 1043456  }
   0x7   : > { %223 = vperm.xlu0 (!%p173_p2), %352, %v220_v0   ;;  %v229_v7 = vshrl.u32 (!%p173_p2), %v228_v5, 7 }
   0x8   : > { %v227_v6 = vunpack.c.0.s8 (!%p173_p2), %v226_v4 }
   0xa   : > { %v230_v8 = vsub.s32 (!%p173_p2), %v227_v6, %v229_v7 }
   0xb   : > { %237 = vperm.xlu0 (!%p173_p2), %352, %v234_v2  }
   0xd   : > { %s421_s16 = smov (!%p203_p3, %s326_s16), 1 }
   0xe   : > { %s339_s21 = sshll.u32 %s421_s16, 3  ;;  %s341_s28 = sshll.u32 %s421_s16, 4 }
   0xf   : > { %s207_s24 = scalar_lea.vmem %s415_s0, %s339_s21  ;;  %s212_s27 = scalar_lea.vmem %s416_s1, %s339_s21 }
  0x10   : > { %v218_v11 = vld [vmem:[%s207_s24] sm:$0xff]  ;;  %s217_s5 = scalar_lea.vmem %s419_s4, %s341_s28 }
  0x11   : > { %v219_v12 = vld [vmem:[%s212_s27] sm:$0xff]  ;;  %v249_v15 = vcombine.high %v218_v11, %v218_v11 }
  0x86   : > { %v224_v9 = vpop.permute.xlu0 %223 }
  0x87   : > { %v231_v10 = vrot.slane %v224_v9, %v230_v8 }
  0x89   : > { %v233_v14 = vmul.f32 %v231_v10, %v219_v12 }
  0x8a   : > { %v238_v13 = vpop.permute.xlu0 %237 }
  0x8b   : > { %v245_v16 = vrot.slane %v238_v13, %v230_v8 }
  0x8d   : > { %v247_v17 = vadd.f32 %v245_v16, %v233_v14 }
  0x8f   : > { %v252_v18 = vcombine.low %v247_v17, %v247_v17  ;;  %v256_v19 = vsel %vm254_vm0, %v249_v15, %v247_v17 }
  0x90   : > { %258 = vst [vmem:[%s217_s5 + $0x8] sm:$0xff] %v256_v19 }
  0x91   : > { %v255_v20 = vsel %vm254_vm0, %v218_v11, %v252_v18 }
  0x92   : > { %257 = vst [vmem:[%s217_s5] sm:$0xff] %v255_v20 }
  0x93 PF: > { %s14_s15 = sadd.s32 1, %s360_s15  }
  0x94   : > { %p11_p4 = scmp.ge.s32.totalorder %s14_s15, 4  }
  0x96   :  { %13 = sbr.rel (!%p11_p4) target bundleno = 1 (0x1), region = 69 }

// kernel: unet_innermost_forward.2
= control target key start
LH: loop header
LB: loop body
LE: loop exit
PB: predicated region body
PF: predicated region fallthrough
CT: control target
= control target key end

     0   :  { %s6819_s15 = smov 0   ;;  %s7872_s0 = inlined_call_operand.vmem [shape: f32[2,4,9,9,4], index: 0, kind: input, shape index: {}]   ;;  %s7873_s1 = inlined_call_operand.vmem [shape: f32[16,4,8], index: 1, kind: input, shape index: {}]   ;;  %s7874_s2 = inlined_call_operand.vmem [shape: f32[16,8,4], index: 2, kind: input, shape index: {}]   ;;  %s7875_s3 = inlined_call_operand.vmem [shape: f32[2,4,64,4], index: 3, kind: output, shape index: {0}]   ;;  %s7876_s4 = inlined_call_operand.vmem [shape: f32[2,2,4], index: 4, kind: output, shape index: {1}]  }
   0x1 LB: > { %s5293_s16 = sadd.s32 4294967295, %s6791_s15   ;;  %p5297_p0 = scmp.ge.s32.totalorder %s6791_s15, 1  ;;  %s6791_s15 = sphi %s6819_s15, %s15_s15  }
   0x2   : > { %p165_p1 = scmp.lt.s32.totalorder %s6791_s15, 3 }
   0x4   : > { %p166_p2 = pnand %p5297_p0, %p165_p1 }
   0x5   : > { %v5310_v0 = vld [vmem:[%s7873_s1 + $0x4] sm:$0xf] (!%p166_p2)  ;;  %vm254_vm0 = vcmask (!%p166_p2), 1043456   ;;  %p195_p3 = scmp.lt.s32.totalorder (!%p166_p2), %s5293_s16, 1  ;;  %v217_v1 = vld [vmem:[%s7873_s1] sm:$0xf] (!%p166_p2) }
   0x6   : > { %169 = sbr.rel (%p166_p2) target bundleno = 990 (0x3de), region = 32  ;;  %6031 = vmatprep.subr.msk.mxu0 (!%p166_p2), %vm254_vm0, %v5310_v0  ;;  %vm229_vm1 = vcmask (!%p166_p2), 31744   ;;  %v5329_v5 = vld [vmem:[%s7873_s1 + $0x8] sm:$0xf] (!%p166_p2)  ;;  %v5347_v14 = vld [vmem:[%s7873_s1 + $0xc] sm:$0xf] (!%p166_p2) }
   0x7   : > { %6032 = vmatpush3.msk.msra.mxu0 (!%p166_p2), %vm254_vm0, %v5310_v0  ;;  %v5365_v23 = vld [vmem:[%s7873_s1 + $0x10] sm:$0xf] (!%p166_p2)  ;;  %v5383_v32 = vld [vmem:[%s7873_s1 + $0x14] sm:$0xf] (!%p166_p2)  ;;  %v5401_v41 = vld [vmem:[%s7873_s1 + $0x18] sm:$0xf] (!%p166_p2) }
   0x8   : > { %6045 = vmatprep.subr.msk.mxu0 (!%p166_p2), %vm254_vm0, %v217_v1  ;;  %v5419_v50 = vld [vmem:[%s7873_s1 + $0x1c] sm:$0xf] (!%p166_p2)  ;;  %v5437_v59 = vld [vmem:[%s7873_s1 + $0x20] sm:$0xf] (!%p166_p2)  ;;  %vm2609_vm2 = vcmask (!%p166_p2), 64512   ;;  %vm2611_vm3 = vcmask (!%p166_p2), 58368  }
   0x9   : > { %vm5203_vm4 = vcmask (!%p166_p2), 1040384   ;;  %vm5205_vm5 = vcmask (!%p166_p2), 25600  }
   0xd   : > { %s7878_s16 = smov (!%p195_p3, %s5293_s16), 1 }
   0xe   : > { %s6695_s21 = smul.u32 576, %s7878_s16  ;;  %s5742_s11 = sshll.u32 %s7878_s16, 8 }
   0xf   : > { %s7719_s14 = scalar_lea.vmem %s7875_s3, %s5742_s11  ;;  %s5301_s17 = sshll.u32 %s7878_s16, 1 }
  0x10   : > { %s6842_s24 = scalar_lea.vmem %s7872_s0, %s6695_s21  ;;  %s208_s20 = scalar_lea.vmem %s7876_s4, %s5301_s17 }
  0x11   : > { %v5302_v2 = vld [vmem:[%s6842_s24 + $0x90] sm:$0xff]  ;;  %v6846_v3 = vld [vmem:[%s6842_s24 + $0xa0] sm:$0xff] }
  0x12   : > { %v6849_v4 = vld [vmem:[%s6842_s24 + $0xb0] sm:$0xff]  ;;  %6033 = vmatprep.mubr.msk.f32.mxu0 %vm229_vm1, %v5302_v2  ;;  %v6861_v6 = vld [vmem:[%s6842_s24 + $0xc0] sm:$0xff] }
  0x13   : > { %6034 = vmatmul.mubr.msk.f32.vlgmr.msra.gmra.mrb[0].mxu0 %vm229_vm1, %v6846_v3  ;;  %v6864_v7 = vld [vmem:[%s6842_s24 + $0xd0] sm:$0xff]  ;;  %v6872_v8 = vld [vmem:[%s6842_s24 + $0xe0] sm:$0xff] }
  0x14   : > { %6046 = vmatpush3.msk.msra.mxu0 %vm254_vm0, %v217_v1  ;;  %6036 = vmatprep.mubr.msk.f32.mxu0 %vm229_vm1, %v6849_v4  ;;  %v6875_v9 = vld [vmem:[%s6842_s24 + $0xf0] sm:$0xff]  ;;  %v6882_v10 = vld [vmem:[%s6842_s24 + $0x100] sm:$0xff] }
  0x15   : > { %6059 = vmatprep.subr.msk.mxu0 %vm254_vm0, %v5329_v5  ;;  %v209_v11 = vld [vmem:[%s6842_s24] sm:$0xff]  ;;  %v6889_v12 = vld [vmem:[%s6842_s24 + $0x10] sm:$0xff] }
  0x16   : > { %v6892_v13 = vld [vmem:[%s6842_s24 + $0x20] sm:$0xff]  ;;  %v6903_v15 = vld [vmem:[%s6842_s24 + $0x30] sm:$0xff] }
  0x17   : > { %6037 = vmatmul.mubr.msk.f32.gmra.mrb[2].mxu0 %vm229_vm1, %v6861_v6  ;;  %v6906_v16 = vld [vmem:[%s6842_s24 + $0x40] sm:$0xff]  ;;  %v6914_v17 = vld [vmem:[%s6842_s24 + $0x50] sm:$0xff] }
  0x18   : > { %6039 = vmatprep.mubr.msk.f32.mxu0 %vm229_vm1, %v6864_v7  ;;  %v6917_v18 = vld [vmem:[%s6842_s24 + $0x60] sm:$0xff]  ;;  %v6924_v19 = vld [vmem:[%s6842_s24 + $0x70] sm:$0xff] }
  0x19   : > { %v495_v20 = vld [vmem:[%s6842_s24 + $0x1] sm:$0xff]  ;;  %v6931_v21 = vld [vmem:[%s6842_s24 + $0x11] sm:$0xff] }
  0x1a   : > { %v6934_v22 = vld [vmem:[%s6842_s24 + $0x21] sm:$0xff]  ;;  %v6945_v24 = vld [vmem:[%s6842_s24 + $0x31] sm:$0xff] }
  0x1b   : > { %6040 = vmatmul.mubr.msk.f32.gmra.mrb[4].mxu0 %vm229_vm1, %v6872_v8  ;;  %v6948_v25 = vld [vmem:[%s6842_s24 + $0x41] sm:$0xff]  ;;  %v6956_v26 = vld [vmem:[%s6842_s24 + $0x51] sm:$0xff] }
  0x1c   : > { %6042 = vmatprep.mubr.msk.f32.mxu0 %vm229_vm1, %v6875_v9  ;;  %v6959_v27 = vld [vmem:[%s6842_s24 + $0x61] sm:$0xff]  ;;  %v6966_v28 = vld [vmem:[%s6842_s24 + $0x71] sm:$0xff] }
  0x1d   : > { %v5339_v29 = vld [vmem:[%s6842_s24 + $0x91] sm:$0xff]  ;;  %v6973_v30 = vld [vmem:[%s6842_s24 + $0xa1] sm:$0xff] }
  0x1e   : > { %v6976_v31 = vld [vmem:[%s6842_s24 + $0xb1] sm:$0xff]  ;;  %v6987_v33 = vld [vmem:[%s6842_s24 + $0xc1] sm:$0xff] }
  0x1f   : > { %6043 = vmatmul.mubr.msk.f32.gmra.mrb[6].mxu0 %vm229_vm1, %v6882_v10  ;;  %v6990_v34 = vld [vmem:[%s6842_s24 + $0xd1] sm:$0xff]  ;;  %v6998_v35 = vld [vmem:[%s6842_s24 + $0xe1] sm:$0xff] }
  0x20   : > { %6047 = vmatprep.mubr.msk.f32.mxu0 %vm229_vm1, %v209_v11  ;;  %v7001_v36 = vld [vmem:[%s6842_s24 + $0xf1] sm:$0xff]  ;;  %v7008_v37 = vld [vmem:[%s6842_s24 + $0x101] sm:$0xff] }
  0x21   : > { %v5357_v38 = vld [vmem:[%s6842_s24 + $0x120] sm:$0xff]  ;;  %v7015_v39 = vld [vmem:[%s6842_s24 + $0x130] sm:$0xff] }
  0x22   : > { %v7018_v40 = vld [vmem:[%s6842_s24 + $0x140] sm:$0xff]  ;;  %v7029_v42 = vld [vmem:[%s6842_s24 + $0x150] sm:$0xff] }
  0x23   : > { %6048 = vmatmul.mubr.msk.f32.vlgmr.msra.gmra.mrb[0].mxu0 %vm229_vm1, %v6889_v12  ;;  %v7032_v43 = vld [vmem:[%s6842_s24 + $0x160] sm:$0xff]  ;;  %v7040_v44 = vld [vmem:[%s6842_s24 + $0x170] sm:$0xff] }
  0x24   : > { %6060 = vmatpush3.msk.msra.mxu0 %vm254_vm0, %v5329_v5  ;;  %6050 = vmatprep.mubr.msk.f32.mxu0 %vm229_vm1, %v6892_v13  ;;  %v7043_v45 = vld [vmem:[%s6842_s24 + $0x180] sm:$0xff]  ;;  %v7050_v46 = vld [vmem:[%s6842_s24 + $0x190] sm:$0xff] }
  0x25   : > { %6073 = vmatprep.subr.msk.mxu0 %vm254_vm0, %v5347_v14  ;;  %v5375_v47 = vld [vmem:[%s6842_s24 + $0x1b0] sm:$0xff]  ;;  %v7057_v48 = vld [vmem:[%s6842_s24 + $0x1c0] sm:$0xff] }
  0x26   : > { %v7060_v49 = vld [vmem:[%s6842_s24 + $0x1d0] sm:$0xff]  ;;  %v7071_v51 = vld [vmem:[%s6842_s24 + $0x1e0] sm:$0xff] }
  0x27   : > { %6051 = vmatmul.mubr.msk.f32.gmra.mrb[2].mxu0 %vm229_vm1, %v6903_v15  ;;  %v7074_v52 = vld [vmem:[%s6842_s24 + $0x1f0] sm:$0xff]  ;;  %v7082_v53 = vld [vmem:[%s6842_s24 + $0x200] sm:$0xff] }
  0x28   : > { %6053 = vmatprep.mubr.msk.f32.mxu0 %vm229_vm1, %v6906_v16  ;;  %v7085_v54 = vld [vmem:[%s6842_s24 + $0x210] sm:$0xff]  ;;  %v7092_v55 = vld [vmem:[%s6842_s24 + $0x220] sm:$0xff] }
  0x29   : > { %v5393_v56 = vld [vmem:[%s6842_s24 + $0x121] sm:$0xff]  ;;  %v7099_v57 = vld [vmem:[%s6842_s24 + $0x131] sm:$0xff] }
  0x2a   : > { %v7102_v58 = vld [vmem:[%s6842_s24 + $0x141] sm:$0xff]  ;;  %v7113_v60 = vld [vmem:[%s6842_s24 + $0x151] sm:$0xff] }
  0x2b   : > { %6054 = vmatmul.mubr.msk.f32.gmra.mrb[4].mxu0 %vm229_vm1, %v6914_v17  ;;  %v7116_v61 = vld [vmem:[%s6842_s24 + $0x161] sm:$0xff]  ;;  %v7124_v62 = vld [vmem:[%s6842_s24 + $0x171] sm:$0xff] }
  0x2c   : > { %6056 = vmatprep.mubr.msk.f32.mxu0 %vm229_vm1, %v6917_v18  ;;  %v7127_v63 = vld [vmem:[%s6842_s24 + $0x181] sm:$0xff]  ;;  %v7134_v0 = vld [vmem:[%s6842_s24 + $0x191] sm:$0xff] }
  0x2d   : > { %v5411_v1 = vld [vmem:[%s6842_s24 + $0x1b1] sm:$0xff]  ;;  %v7141_v2 = vld [vmem:[%s6842_s24 + $0x1c1] sm:$0xff] }
  0x2e   : > { %v7144_v5 = vld [vmem:[%s6842_s24 + $0x1d1] sm:$0xff]  ;;  %v5455_v11 = vld [vmem:[%s7873_s1 + $0x24] sm:$0xf] }
  0x2f   : > { %6057 = vmatmul.mubr.msk.f32.gmra.mrb[6].mxu0 %vm229_vm1, %v6924_v19 }
  0x30   : > { %6061 = vmatprep.mubr.msk.f32.mxu0 %vm229_vm1, %v495_v20  ;;  %v7158_v20 = vld [vmem:[%s6842_s24 + $0x1f1] sm:$0xff] }
  0x33   : > { %6062 = vmatmul.mubr.msk.f32.vlgmr.msra.gmra.mrb[0].mxu0 %vm229_vm1, %v6931_v21 }
  0x34   : > { %6074 = vmatpush3.msk.msra.mxu0 %vm254_vm0, %v5347_v14  ;;  %6064 = vmatprep.mubr.msk.f32.mxu0 %vm229_vm1, %v6934_v22  ;;  %v7155_v14 = vld [vmem:[%s6842_s24 + $0x1e1] sm:$0xff] }
  0x35   : > { %6087 = vmatprep.subr.msk.mxu0 %vm254_vm0, %v5365_v23 }
  0x37   : > { %6065 = vmatmul.mubr.msk.f32.gmra.mrb[2].mxu0 %vm229_vm1, %v6945_v24 }
  0x38   : > { %6067 = vmatprep.mubr.msk.f32.mxu0 %vm229_vm1, %v6948_v25 }
  0x3b   : > { %6068 = vmatmul.mubr.msk.f32.gmra.mrb[4].mxu0 %vm229_vm1, %v6956_v26 }
  0x3c   : > { %6070 = vmatprep.mubr.msk.f32.mxu0 %vm229_vm1, %v6959_v27 }
  0x3f   : > { %6071 = vmatmul.mubr.msk.f32.gmra.mrb[6].mxu0 %vm229_vm1, %v6966_v28 }
  0x40   : > { %6075 = vmatprep.mubr.msk.f32.mxu0 %vm229_vm1, %v5339_v29  ;;  %v7169_v29 = vld [vmem:[%s6842_s24 + $0x211] sm:$0xff] }
  0x43   : > { %6076 = vmatmul.mubr.msk.f32.vlgmr.msra.gmra.mrb[0].mxu0 %vm229_vm1, %v6973_v30 }
  0x44   : > { %6088 = vmatpush3.msk.msra.mxu0 %vm254_vm0, %v5365_v23  ;;  %6078 = vmatprep.mubr.msk.f32.mxu0 %vm229_vm1, %v6976_v31  ;;  %v7166_v23 = vld [vmem:[%s6842_s24 + $0x201] sm:$0xff] }
  0x45   : > { %6101 = vmatprep.subr.msk.mxu0 %vm254_vm0, %v5383_v32 }
  0x47   : > { %6079 = vmatmul.mubr.msk.f32.gmra.mrb[2].mxu0 %vm229_vm1, %v6987_v33 }
  0x48   : > { %6081 = vmatprep.mubr.msk.f32.mxu0 %vm229_vm1, %v6990_v34 }
  0x4b   : > { %6082 = vmatmul.mubr.msk.f32.gmra.mrb[4].mxu0 %vm229_vm1, %v6998_v35 }
  0x4c   : > { %6084 = vmatprep.mubr.msk.f32.mxu0 %vm229_vm1, %v7001_v36 }
  0x4f   : > { %6085 = vmatmul.mubr.msk.f32.gmra.mrb[6].mxu0 %vm229_vm1, %v7008_v37 }
  0x50   : > { %6089 = vmatprep.mubr.msk.f32.mxu0 %vm229_vm1, %v5357_v38  ;;  %v5473_v38 = vld [vmem:[%s7873_s1 + $0x28] sm:$0xf] }
  0x53   : > { %6090 = vmatmul.mubr.msk.f32.vlgmr.msra.gmra.mrb[0].mxu0 %vm229_vm1, %v7015_v39 }
  0x54   : > { %6102 = vmatpush3.msk.msra.mxu0 %vm254_vm0, %v5383_v32  ;;  %6092 = vmatprep.mubr.msk.f32.mxu0 %vm229_vm1, %v7018_v40  ;;  %v7176_v32 = vld [vmem:[%s6842_s24 + $0x221] sm:$0xff] }
  0x55   : > { %6115 = vmatprep.subr.msk.mxu0 %vm254_vm0, %v5401_v41 }
  0x57   : > { %6093 = vmatmul.mubr.msk.f32.gmra.mrb[2].mxu0 %vm229_vm1, %v7029_v42 }
  0x58   : > { %6095 = vmatprep.mubr.msk.f32.mxu0 %vm229_vm1, %v7032_v43 }
  0x5b   : > { %6096 = vmatmul.mubr.msk.f32.gmra.mrb[4].mxu0 %vm229_vm1, %v7040_v44 }
  0x5c   : > { %6098 = vmatprep.mubr.msk.f32.mxu0 %vm229_vm1, %v7043_v45 }
  0x5f   : > { %6099 = vmatmul.mubr.msk.f32.gmra.mrb[6].mxu0 %vm229_vm1, %v7050_v46 }
  0x60   : > { %6103 = vmatprep.mubr.msk.f32.mxu0 %vm229_vm1, %v5375_v47 }
  0x63   : > { %6104 = vmatmul.mubr.msk.f32.vlgmr.msra.gmra.mrb[0].mxu0 %vm229_vm1, %v7057_v48 }
  0x64   : > { %6116 = vmatpush3.msk.msra.mxu0 %vm254_vm0, %v5401_v41  ;;  %6106 = vmatprep.mubr.msk.f32.mxu0 %vm229_vm1, %v7060_v49 }
  0x65   : > { %6129 = vmatprep.subr.msk.mxu0 %vm254_vm0, %v5419_v50 }
  0x67   : > { %6107 = vmatmul.mubr.msk.f32.gmra.mrb[2].mxu0 %vm229_vm1, %v7071_v51 }
  0x68   : > { %6109 = vmatprep.mubr.msk.f32.mxu0 %vm229_vm1, %v7074_v52 }
  0x6b   : > { %6110 = vmatmul.mubr.msk.f32.gmra.mrb[4].mxu0 %vm229_vm1, %v7082_v53 }
  0x6c   : > { %6112 = vmatprep.mubr.msk.f32.mxu0 %vm229_vm1, %v7085_v54 }
  0x6f   : > { %6113 = vmatmul.mubr.msk.f32.gmra.mrb[6].mxu0 %vm229_vm1, %v7092_v55 }
  0x70   : > { %6117 = vmatprep.mubr.msk.f32.mxu0 %vm229_vm1, %v5393_v56 }
  0x73   : > { %6118 = vmatmul.mubr.msk.f32.vlgmr.msra.gmra.mrb[0].mxu0 %vm229_vm1, %v7099_v57 }
  0x74   : > { %6130 = vmatpush3.msk.msra.mxu0 %vm254_vm0, %v5419_v50  ;;  %6120 = vmatprep.mubr.msk.f32.mxu0 %vm229_vm1, %v7102_v58 }
  0x75   : > { %6143 = vmatprep.subr.msk.mxu0 %vm254_vm0, %v5437_v59 }
  0x77   : > { %6121 = vmatmul.mubr.msk.f32.gmra.mrb[2].mxu0 %vm229_vm1, %v7113_v60 }
  0x78   : > { %6123 = vmatprep.mubr.msk.f32.mxu0 %vm229_vm1, %v7116_v61 }
  0x7b   : > { %6124 = vmatmul.mubr.msk.f32.gmra.mrb[4].mxu0 %vm229_vm1, %v7124_v62 }
  0x7c   : > { %6126 = vmatprep.mubr.msk.f32.mxu0 %vm229_vm1, %v7127_v63 }
  0x7f   : > { %6127 = vmatmul.mubr.msk.f32.gmra.mrb[6].mxu0 %vm229_vm1, %v7134_v0 }
  0x80   : > { %6131 = vmatprep.mubr.msk.f32.mxu0 %vm229_vm1, %v5411_v1 }
  0x83   : > { %6132 = vmatmul.mubr.msk.f32.vlgmr.msra.gmra.mrb[0].mxu0 %vm229_vm1, %v7141_v2 }
  0x84   : > { %6144 = vmatpush3.msk.msra.mxu0 %vm254_vm0, %v5437_v59  ;;  %6134 = vmatprep.mubr.msk.f32.mxu0 %vm229_vm1, %v7144_v5 }
  0x85   : > { %6157 = vmatprep.subr.msk.mxu0 %vm254_vm0, %v5455_v11 }
  0x87   : > { %6135 = vmatmul.mubr.msk.f32.gmra.mrb[2].mxu0 %vm229_vm1, %v7155_v14 }
  0x88   : > { %6137 = vmatprep.mubr.msk.f32.mxu0 %vm229_vm1, %v7158_v20 }
  0x8b   : > { %6138 = vmatmul.mubr.msk.f32.gmra.mrb[4].mxu0 %vm229_vm1, %v7166_v23 }
  0x8c   : > { %6140 = vmatprep.mubr.msk.f32.mxu0 %vm229_vm1, %v7169_v29 }
  0x8f   : > { %6141 = vmatmul.mubr.msk.f32.gmra.mrb[6].mxu0 %vm229_vm1, %v7176_v32 }
  0x90   : > { %6145 = vmatprep.mubr.msk.f32.mxu0 %vm229_vm1, %v6889_v12  ;;  %v5436_v12 = vld [vmem:[%s6842_s24 + $0x80] sm:$0xff] }
  0x93   : > { %6146 = vmatmul.mubr.msk.f32.vlgmr.msra.gmra.mrb[0].mxu0 %vm229_vm1, %v6892_v13  ;;  %v5491_v13 = vld [vmem:[%s7873_s1 + $0x2c] sm:$0xf] }
  0x94   : > { %6158 = vmatpush3.msk.msra.mxu0 %vm254_vm0, %v5455_v11  ;;  %6148 = vmatprep.mubr.msk.f32.mxu0 %vm229_vm1, %v6903_v15  ;;  %v5563_v15 = vld [vmem:[%s7873_s1 + $0x3c] sm:$0xf] }
  0x95   : > { %6171 = vmatprep.subr.msk.mxu0 %vm254_vm0, %v5473_v38 }
  0x97   : > { %6149 = vmatmul.mubr.msk.f32.gmra.mrb[2].mxu0 %vm229_vm1, %v6906_v16  ;;  %v5526_v16 = vld [vmem:[%s6842_s24 + $0x230] sm:$0xff] }
  0x98   : > { %6151 = vmatprep.mubr.msk.f32.mxu0 %vm229_vm1, %v6914_v17  ;;  %v5544_v17 = vld [vmem:[%s6842_s24 + $0x1a1] sm:$0xff] }
  0x9b   : > { %6152 = vmatmul.mubr.msk.f32.gmra.mrb[4].mxu0 %vm229_vm1, %v6917_v18  ;;  %v5562_v18 = vld [vmem:[%s6842_s24 + $0x231] sm:$0xff] }
  0x9c   : > { %6154 = vmatprep.mubr.msk.f32.mxu0 %vm229_vm1, %v6924_v19  ;;  %v6793_v19 = vmov 0.0  }
  0x9d   : > { %2610 = vst.msk [vmem:[#allocation2] sm:$0xff] %vm2609_vm2, %v6793_v19  ;;  %2613 = vst.msk [vmem:[#allocation2 + $0x10] sm:$0xff] %vm2609_vm2, %v6793_v19 }
  0x9e   : > { %2612 = vst.msk [vmem:[#allocation2 + $0x8] sm:$0x3] %vm2611_vm3, %v6793_v19  ;;  %2614 = vst.msk [vmem:[#allocation2 + $0x18] sm:$0x3] %vm2611_vm3, %v6793_v19 }
  0x9f   : > { %6155 = vmatmul.mubr.msk.f32.gmra.mrb[6].mxu0 %vm229_vm1, %v5436_v12  ;;  %2615 = vst.msk [vmem:[#allocation2 + $0x20] sm:$0xff] %vm2609_vm2, %v6793_v19  ;;  %2617 = vst.msk [vmem:[#allocation2 + $0x30] sm:$0xff] %vm2609_vm2, %v6793_v19  ;;  %v5653_v12 = vld [vmem:[%s7874_s2 + $0x48] sm:$0xff] }
  0xa0   : > { %6159 = vmatprep.mubr.msk.f32.mxu0 %vm229_vm1, %v6846_v3  ;;  %v5454_v3 = vld [vmem:[%s6842_s24 + $0x110] sm:$0xff]  ;;  %2616 = vst.msk [vmem:[#allocation2 + $0x28] sm:$0x3] %vm2611_vm3, %v6793_v19  ;;  %2618 = vst.msk [vmem:[#allocation2 + $0x38] sm:$0x3] %vm2611_vm3, %v6793_v19 }
  0xa1   : > { %2619 = vst.msk [vmem:[#allocation2 + $0x40] sm:$0xff] %vm2609_vm2, %v6793_v19  ;;  %2621 = vst.msk [vmem:[#allocation2 + $0x50] sm:$0xff] %vm2609_vm2, %v6793_v19 }
  0xa2   : > { %2620 = vst.msk [vmem:[#allocation2 + $0x48] sm:$0x3] %vm2611_vm3, %v6793_v19  ;;  %2622 = vst.msk [vmem:[#allocation2 + $0x58] sm:$0x3] %vm2611_vm3, %v6793_v19 }
  0xa3   : > { %6160 = vmatmul.mubr.msk.f32.vlgmr.msra.gmra.mrb[0].mxu0 %vm229_vm1, %v6849_v4  ;;  %v5509_v4 = vld [vmem:[%s7873_s1 + $0x30] sm:$0xf]  ;;  %2623 = vst.msk [vmem:[#allocation2 + $0x60] sm:$0xff] %vm2609_vm2, %v6793_v19  ;;  %2625 = vst.msk [vmem:[#allocation2 + $0x70] sm:$0xff] %vm2609_vm2, %v6793_v19 }
  0xa4   : > { %6172 = vmatpush3.msk.msra.mxu0 %vm254_vm0, %v5473_v38  ;;  %6162 = vmatprep.mubr.msk.f32.mxu0 %vm229_vm1, %v6861_v6  ;;  %v5472_v6 = vld [vmem:[%s6842_s24 + $0x81] sm:$0xff]  ;;  %2624 = vst.msk [vmem:[#allocation2 + $0x68] sm:$0x3] %vm2611_vm3, %v6793_v19  ;;  %2626 = vst.msk [vmem:[#allocation2 + $0x78] sm:$0x3] %vm2611_vm3, %v6793_v19  ;;  %v5635_v38 = vld [vmem:[%s7874_s2 + $0x38] sm:$0xff] }
  0xa5   : > { %6185 = vmatprep.subr.msk.mxu0 %vm254_vm0, %v5491_v13  ;;  %2627 = vst.msk [vmem:[#allocation2 + $0x80] sm:$0xff] %vm2609_vm2, %v6793_v19  ;;  %2629 = vst.msk [vmem:[#allocation2 + $0x90] sm:$0xff] %vm2609_vm2, %v6793_v19 }
  0xa6   : > { %2628 = vst.msk [vmem:[#allocation2 + $0x88] sm:$0x3] %vm2611_vm3, %v6793_v19  ;;  %2630 = vst.msk [vmem:[#allocation2 + $0x98] sm:$0x3] %vm2611_vm3, %v6793_v19 }
  0xa7   : > { %6163 = vmatmul.mubr.msk.f32.gmra.mrb[2].mxu0 %vm229_vm1, %v6864_v7  ;;  %v5527_v7 = vld [vmem:[%s7873_s1 + $0x34] sm:$0xf] }
  0xa8   : > { %6165 = vmatprep.mubr.msk.f32.mxu0 %vm229_vm1, %v6872_v8  ;;  %v5490_v8 = vld [vmem:[%s6842_s24 + $0x111] sm:$0xff] }
  0xab   : > { %6166 = vmatmul.mubr.msk.f32.gmra.mrb[4].mxu0 %vm229_vm1, %v6875_v9  ;;  %v5545_v9 = vld [vmem:[%s7873_s1 + $0x38] sm:$0xf] }
  0xac   : > { %6168 = vmatprep.mubr.msk.f32.mxu0 %vm229_vm1, %v6882_v10  ;;  %v5508_v10 = vld [vmem:[%s6842_s24 + $0x1a0] sm:$0xff] }
  0xaf   : > { %6169 = vmatmul.mubr.msk.f32.gmra.mrb[6].mxu0 %vm229_vm1, %v5454_v3 }
  0xb0   : > { %6173 = vmatprep.mubr.msk.f32.mxu0 %vm229_vm1, %v6931_v21  ;;  %v5573_v21 = vld [vmem:[%s7874_s2 + $0x8] sm:$0xff] }
  0xb1   : > { %6255 = vmatprep.subr.mxu1 %v5573_v21 }
  0xb2   : > { %6256 = vmatpush3.msra.mxu1 %v5573_v21 }
  0xb3   : > { %6174 = vmatmul.mubr.msk.f32.vlgmr.msra.gmra.mrb[0].mxu0 %vm229_vm1, %v6934_v22  ;;  %v2648_v22 = vld [vmem:[%s7874_s2] sm:$0xff] }
  0xb4   : > { %6186 = vmatpush3.msk.msra.mxu0 %vm254_vm0, %v5491_v13  ;;  %6176 = vmatprep.mubr.msk.f32.mxu0 %vm229_vm1, %v6945_v24  ;;  %v7365_v24 = vld [vmem:[#allocation2 + $0x1] sm:$0xff] }
  0xb5   : > { %6199 = vmatprep.subr.msk.mxu0 %vm254_vm0, %v5509_v4  ;;  %6269 = vmatprep.subr.mxu1 %v2648_v22  ;;  %v5652_v13 = vld [vmem:[%s7874_s2 + $0x40] sm:$0xff] }
  0xb6   : > { %6257 = vmatprep.mubr.msk.f32.mxu1 %vm2609_vm2, %v7365_v24 }
  0xb7   : > { %6177 = vmatmul.mubr.msk.f32.gmra.mrb[2].mxu0 %vm229_vm1, %v6948_v25 }
  0xb8   : > { %6179 = vmatprep.mubr.msk.f32.mxu0 %vm229_vm1, %v6956_v26 }
  0xbb   : > { %6180 = vmatmul.mubr.msk.f32.gmra.mrb[4].mxu0 %vm229_vm1, %v6959_v27 }
  0xbc   : > { %6182 = vmatprep.mubr.msk.f32.mxu0 %vm229_vm1, %v6966_v28 }
  0xbf   : > { %6183 = vmatmul.mubr.msk.f32.gmra.mrb[6].mxu0 %vm229_vm1, %v5472_v6  ;;  %v5679_v6 = vld [vmem:[%s7874_s2 + $0x58] sm:$0xff] }
  0xc0   : > { %6187 = vmatprep.mubr.msk.f32.mxu0 %vm229_vm1, %v6973_v30 }
  0xc3   : > { %6188 = vmatmul.mubr.msk.f32.vlgmr.msra.gmra.mrb[0].mxu0 %vm229_vm1, %v6976_v31 }
  0xc4   : > { %6200 = vmatpush3.msk.msra.mxu0 %vm254_vm0, %v5509_v4  ;;  %6190 = vmatprep.mubr.msk.f32.mxu0 %vm229_vm1, %v6987_v33  ;;  %v5670_v4 = vld [vmem:[%s7874_s2 + $0x50] sm:$0xff] }
  0xc5   : > { %6213 = vmatprep.subr.msk.mxu0 %vm254_vm0, %v5527_v7 }
  0xc7   : > { %6191 = vmatmul.mubr.msk.f32.gmra.mrb[2].mxu0 %vm229_vm1, %v6990_v34 }
  0xc8   : > { %6193 = vmatprep.mubr.msk.f32.mxu0 %vm229_vm1, %v6998_v35 }
  0xcb   : > { %6194 = vmatmul.mubr.msk.f32.gmra.mrb[4].mxu0 %vm229_vm1, %v7001_v36 }
  0xcc   : > { %6196 = vmatprep.mubr.msk.f32.mxu0 %vm229_vm1, %v7008_v37 }
  0xcf   : > { %6197 = vmatmul.mubr.msk.f32.gmra.mrb[6].mxu0 %vm229_vm1, %v5490_v8  ;;  %v4206_v8 = vld [vmem:[#allocation2 + $0x90] sm:$0xff] }
  0xd0   : > { %6201 = vmatprep.mubr.msk.f32.mxu0 %vm229_vm1, %v7015_v39 }
  0xd3   : > { %6202 = vmatmul.mubr.msk.f32.vlgmr.msra.gmra.mrb[0].mxu0 %vm229_vm1, %v7018_v40 }
  0xd4   : > { %6214 = vmatpush3.msk.msra.mxu0 %vm254_vm0, %v5527_v7  ;;  %6204 = vmatprep.mubr.msk.f32.mxu0 %vm229_vm1, %v7029_v42  ;;  %v5697_v7 = vld [vmem:[%s7874_s2 + $0x68] sm:$0xff] }
  0xd5   : > { %6227 = vmatprep.subr.msk.mxu0 %vm254_vm0, %v5545_v9 }
  0xd7   : > { %6205 = vmatmul.mubr.msk.f32.gmra.mrb[2].mxu0 %vm229_vm1, %v7032_v43  ;;  %v5590_v43 = vld [vmem:[%s7874_s2 + $0x10] sm:$0xff] }
  0xd8   : > { %6207 = vmatprep.mubr.msk.f32.mxu0 %vm229_vm1, %v7040_v44 }
  0xdb   : > { %6208 = vmatmul.mubr.msk.f32.gmra.mrb[4].mxu0 %vm229_vm1, %v7043_v45 }
  0xdc   : > { %6210 = vmatprep.mubr.msk.f32.mxu0 %vm229_vm1, %v7050_v46 }
  0xdf   : > { %6211 = vmatmul.mubr.msk.f32.gmra.mrb[6].mxu0 %vm229_vm1, %v5508_v10  ;;  %v4353_v10 = vld [vmem:[#allocation2 + $0x91] sm:$0xff] }
  0xe0   : > { %6215 = vmatprep.mubr.msk.f32.mxu0 %vm229_vm1, %v7057_v48 }
  0xe3   : > { %6216 = vmatmul.mubr.msk.f32.vlgmr.msra.gmra.mrb[0].mxu0 %vm229_vm1, %v7060_v49 }
  0xe4   : > { %6228 = vmatpush3.msk.msra.mxu0 %vm254_vm0, %v5545_v9  ;;  %6218 = vmatprep.mubr.msk.f32.mxu0 %vm229_vm1, %v7071_v51  ;;  %v2640_v51 = vld [vmem:[#allocation2] sm:$0xff] }
  0xe5   : > { %6241 = vmatprep.subr.msk.mxu0 %vm254_vm0, %v5563_v15  ;;  %v5696_v9 = vld [vmem:[%s7874_s2 + $0x60] sm:$0xff] }
  0xe7   : > { %6219 = vmatmul.mubr.msk.f32.gmra.mrb[2].mxu0 %vm229_vm1, %v7074_v52 }
  0xe8   : > { %6221 = vmatprep.mubr.msk.f32.mxu0 %vm229_vm1, %v7082_v53 }
  0xeb   : > { %6222 = vmatmul.mubr.msk.f32.gmra.mrb[4].mxu0 %vm229_vm1, %v7085_v54  ;;  %v5599_v54 = vld [vmem:[%s7874_s2 + $0x18] sm:$0xff] }
  0xec   : > { %6224 = vmatprep.mubr.msk.f32.mxu0 %vm229_vm1, %v7092_v55 }
  0xef   : > { %6225 = vmatmul.mubr.msk.f32.gmra.mrb[6].mxu0 %vm229_vm1, %v5526_v16  ;;  %v5723_v16 = vld [vmem:[%s7874_s2 + $0x78] sm:$0xff] }
  0xf0   : > { %6229 = vmatprep.mubr.msk.f32.mxu0 %vm229_vm1, %v7099_v57 }
  0xf3   : > { %6230 = vmatmul.mubr.msk.f32.vlgmr.msra.gmra.mrb[0].mxu0 %vm229_vm1, %v7102_v58 }
  0xf4   : > { %6242 = vmatpush3.msk.msra.mxu0 %vm254_vm0, %v5563_v15  ;;  %6232 = vmatprep.mubr.msk.f32.mxu0 %vm229_vm1, %v7113_v60  ;;  %v5714_v15 = vld [vmem:[%s7874_s2 + $0x70] sm:$0xff] }
  0xf7   : > { %6233 = vmatmul.mubr.msk.f32.gmra.mrb[2].mxu0 %vm229_vm1, %v7116_v61  ;;  %v5609_v61 = vld [vmem:[%s7874_s2 + $0x28] sm:$0xff] }
  0xf8   : > { %6235 = vmatprep.mubr.msk.f32.mxu0 %vm229_vm1, %v7124_v62 }
  0xfb   : > { %6236 = vmatmul.mubr.msk.f32.gmra.mrb[4].mxu0 %vm229_vm1, %v7127_v63  ;;  %v5608_v63 = vld [vmem:[%s7874_s2 + $0x20] sm:$0xff] }
  0xfc   : > { %6238 = vmatprep.mubr.msk.f32.mxu0 %vm229_vm1, %v7134_v0  ;;  %v3289_v0 = vld [vmem:[#allocation2 + $0x2] sm:$0xff] }
  0xff   : > { %6239 = vmatmul.mubr.msk.f32.gmra.mrb[6].mxu0 %vm229_vm1, %v5544_v17  ;;  %v4994_v17 = vld [vmem:[#allocation2 + $0x92] sm:$0xff] }
 0x100   : > { %6243 = vmatprep.mubr.msk.f32.mxu0 %vm229_vm1, %v7141_v2 }
 0x103   : > { %6244 = vmatmul.mubr.msk.f32.vlgmr.msra.gmra.mrb[0].mxu0 %vm229_vm1, %v7144_v5  ;;  %v5626_v5 = vld [vmem:[%s7874_s2 + $0x30] sm:$0xff] }
 0x104   : > { %6246 = vmatprep.mubr.msk.f32.mxu0 %vm229_vm1, %v7155_v14 }
 0x107   : > { %6247 = vmatmul.mubr.msk.f32.gmra.mrb[2].mxu0 %vm229_vm1, %v7158_v20 }
 0x108   : > { %6249 = vmatprep.mubr.msk.f32.mxu0 %vm229_vm1, %v7166_v23 }
 0x10b   : > { %6250 = vmatmul.mubr.msk.f32.gmra.mrb[4].mxu0 %vm229_vm1, %v7169_v29 }
 0x10c   : > { %6252 = vmatprep.mubr.msk.f32.mxu0 %vm229_vm1, %v7176_v32 }
 0x10f   : > { %6253 = vmatmul.mubr.msk.f32.gmra.mrb[6].mxu0 %vm229_vm1, %v5562_v18 }
 0x1d6   : > { %v6245_v25 = vpop.f32.mrb[0].mxu0 }
 0x1d7   : > { %6705 = vtanh.f32 %v6245_v25  ;;  %v2554_v26 = vpop.f32.mrb[1].mxu0 }
 0x1d8   : > { %6707 = vtanh.f32 %v2554_v26 }
 0x1da   : > { %v6248_v27 = vpop.f32.mrb[2].mxu0 }
 0x1db   : > { %6709 = vtanh.f32 %v6248_v27  ;;  %v2564_v28 = vpop.f32.mrb[3].mxu0 }
 0x1dc   : > { %6711 = vtanh.f32 %v2564_v28 }
 0x1de   : > { %v6251_v30 = vpop.f32.mrb[4].mxu0 }
 0x1df   : > { %6713 = vtanh.f32 %v6251_v30  ;;  %v2574_v31 = vpop.f32.mrb[5].mxu0 }
 0x1e0   : > { %6715 = vtanh.f32 %v2574_v31 }
 0x1e1   : > { %v6706_v33 = vpop.eup %6705 }
 0x1e2   : > { %v6708_v34 = vpop.eup %6707  ;;  %v6254_v35 = vpop.f32.mrb[6].mxu0  ;;  %2633 = vst.msk [vmem:[#allocation2 + $0x21] sm:$0xff] %vm2609_vm2, %v6706_v33 }
 0x1e3   : > { %6717 = vtanh.f32 %v6254_v35  ;;  %v2584_v36 = vpop.f32.mrb[7].mxu0  ;;  %2632 = vst.msk [vmem:[#allocation2 + $0x11] sm:$0xff] %vm2609_vm2, %v6708_v34 }
 0x1e4   : > { %6719 = vtanh.f32 %v2584_v36 }
 0x1e5   : > { %v6710_v37 = vpop.eup %6709 }
 0x1e6   : > { %v6712_v39 = vpop.eup %6711  ;;  %2635 = vst.msk [vmem:[#allocation2 + $0x41] sm:$0xff] %vm2609_vm2, %v6710_v37 }
 0x1e7   : > { %2634 = vst.msk [vmem:[#allocation2 + $0x31] sm:$0xff] %vm2609_vm2, %v6712_v39 }
 0x1e9   : > { %v6714_v40 = vpop.eup %6713  ;;  %v7382_v44 = vld [vmem:[#allocation2 + $0x21] sm:$0xff] }
 0x1ea   : > { %v6716_v41 = vpop.eup %6715  ;;  %2637 = vst.msk [vmem:[#allocation2 + $0x61] sm:$0xff] %vm2609_vm2, %v6714_v40  ;;  %v7374_v42 = vld [vmem:[#allocation2 + $0x11] sm:$0xff]  ;;  %v7416_v55 = vld [vmem:[#allocation2 + $0x20] sm:$0xff] }
 0x1eb   : > { %2636 = vst.msk [vmem:[#allocation2 + $0x51] sm:$0xff] %vm2609_vm2, %v6716_v41  ;;  %6258 = vmatmul.mubr.msk.f32.vlgmr.msra.gmra.mrb[0].mxu1 %vm2609_vm2, %v7374_v42  ;;  %v7409_v53 = vld [vmem:[#allocation2 + $0x10] sm:$0xff]  ;;  %v7490_v11 = vld [vmem:[#allocation2 + $0x22] sm:$0xff] }
 0x1ec   : > { %6270 = vmatpush3.msra.mxu1 %v2648_v22  ;;  %6260 = vmatprep.mubr.msk.f32.mxu1 %vm2609_vm2, %v7382_v44  ;;  %v7483_v2 = vld [vmem:[#allocation2 + $0x12] sm:$0xff] }
 0x1ed   : > { %v6718_v45 = vpop.eup %6717  ;;  %6283 = vmatprep.subr.mxu1 %v5590_v43  ;;  %v7392_v48 = vld [vmem:[#allocation2 + $0x41] sm:$0xff] }
 0x1ee   : > { %v6720_v46 = vpop.eup %6719  ;;  %2639 = vst.msk [vmem:[#allocation2 + $0x81] sm:$0xff] %vm2609_vm2, %v6718_v45  ;;  %v7387_v47 = vld [vmem:[#allocation2 + $0x31] sm:$0xff]  ;;  %v7424_v57 = vld [vmem:[#allocation2 + $0x40] sm:$0xff] }
 0x1ef   : > { %2638 = vst.msk [vmem:[#allocation2 + $0x71] sm:$0xff] %vm2609_vm2, %v6720_v46  ;;  %6261 = vmatmul.mubr.msk.f32.gmra.mrb[2].mxu1 %vm2609_vm2, %v7387_v47  ;;  %v7420_v56 = vld [vmem:[#allocation2 + $0x30] sm:$0xff]  ;;  %v7498_v20 = vld [vmem:[#allocation2 + $0x42] sm:$0xff] }
 0x1f0   : > { %6263 = vmatprep.mubr.msk.f32.mxu1 %vm2609_vm2, %v7392_v48  ;;  %v7494_v14 = vld [vmem:[#allocation2 + $0x32] sm:$0xff] }
 0x1f1   : > { %v7400_v50 = vld [vmem:[#allocation2 + $0x61] sm:$0xff] }
 0x1f2   : > { %v7396_v49 = vld [vmem:[#allocation2 + $0x51] sm:$0xff]  ;;  %v7432_v59 = vld [vmem:[#allocation2 + $0x60] sm:$0xff] }
 0x1f3   : > { %6264 = vmatmul.mubr.msk.f32.gmra.mrb[4].mxu1 %vm2609_vm2, %v7396_v49  ;;  %v7428_v58 = vld [vmem:[#allocation2 + $0x50] sm:$0xff]  ;;  %v7506_v29 = vld [vmem:[#allocation2 + $0x62] sm:$0xff] }
 0x1f4   : > { %6266 = vmatprep.mubr.msk.f32.mxu1 %vm2609_vm2, %v7400_v50  ;;  %v7502_v23 = vld [vmem:[#allocation2 + $0x52] sm:$0xff] }
 0x1f5   : > { %v7457_v62 = vld [vmem:[#allocation2 + $0x80] sm:$0xff] }
 0x1f6   : > { %v7404_v52 = vld [vmem:[#allocation2 + $0x71] sm:$0xff]  ;;  %v7478_v1 = vld [vmem:[#allocation2 + $0x81] sm:$0xff] }
 0x1f7   : > { %6267 = vmatmul.mubr.msk.f32.gmra.mrb[6].mxu1 %vm2609_vm2, %v7404_v52  ;;  %v7436_v60 = vld [vmem:[#allocation2 + $0x70] sm:$0xff]  ;;  %v7569_v3 = vld [vmem:[#allocation2 + $0x82] sm:$0xff] }
 0x1f8   : > { %6271 = vmatprep.mubr.msk.f32.mxu1 %vm2609_vm2, %v2640_v51  ;;  %v7510_v32 = vld [vmem:[#allocation2 + $0x72] sm:$0xff] }
 0x1fb   : > { %6272 = vmatmul.mubr.msk.f32.vlgmr.msra.gmra.mrb[0].mxu1 %vm2609_vm2, %v7409_v53 }
 0x1fc   : > { %6284 = vmatpush3.msra.mxu1 %v5590_v43  ;;  %6274 = vmatprep.mubr.msk.f32.mxu1 %vm2609_vm2, %v7416_v55 }
 0x1fd   : > { %6297 = vmatprep.subr.mxu1 %v5599_v54 }
 0x1ff   : > { %6275 = vmatmul.mubr.msk.f32.gmra.mrb[2].mxu1 %vm2609_vm2, %v7420_v56 }
 0x200   : > { %6277 = vmatprep.mubr.msk.f32.mxu1 %vm2609_vm2, %v7424_v57 }
 0x203   : > { %6278 = vmatmul.mubr.msk.f32.gmra.mrb[4].mxu1 %vm2609_vm2, %v7428_v58 }
 0x204   : > { %6280 = vmatprep.mubr.msk.f32.mxu1 %vm2609_vm2, %v7432_v59 }
 0x207   : > { %6281 = vmatmul.mubr.msk.f32.gmra.mrb[6].mxu1 %vm2609_vm2, %v7436_v60 }
 0x208   : > { %6285 = vmatprep.mubr.msk.f32.mxu1 %vm2609_vm2, %v7409_v53 }
 0x20b   : > { %6286 = vmatmul.mubr.msk.f32.vlgmr.msra.gmra.mrb[0].mxu1 %vm2609_vm2, %v7416_v55 }
 0x20c   : > { %6298 = vmatpush3.msra.mxu1 %v5599_v54  ;;  %6288 = vmatprep.mubr.msk.f32.mxu1 %vm2609_vm2, %v7420_v56 }
 0x20d   : > { %6311 = vmatprep.subr.mxu1 %v5609_v61 }
 0x20f   : > { %6289 = vmatmul.mubr.msk.f32.gmra.mrb[2].mxu1 %vm2609_vm2, %v7424_v57 }
 0x210   : > { %6291 = vmatprep.mubr.msk.f32.mxu1 %vm2609_vm2, %v7428_v58 }
 0x213   : > { %6292 = vmatmul.mubr.msk.f32.gmra.mrb[4].mxu1 %vm2609_vm2, %v7432_v59 }
 0x214   : > { %6294 = vmatprep.mubr.msk.f32.mxu1 %vm2609_vm2, %v7436_v60 }
 0x217   : > { %6295 = vmatmul.mubr.msk.f32.gmra.mrb[6].mxu1 %vm2609_vm2, %v7457_v62 }
 0x218   : > { %6299 = vmatprep.mubr.msk.f32.mxu1 %vm2609_vm2, %v7374_v42 }
 0x21b   : > { %6300 = vmatmul.mubr.msk.f32.vlgmr.msra.gmra.mrb[0].mxu1 %vm2609_vm2, %v7382_v44 }
 0x21c   : > { %6312 = vmatpush3.msra.mxu1 %v5609_v61  ;;  %6302 = vmatprep.mubr.msk.f32.mxu1 %vm2609_vm2, %v7387_v47 }
 0x21d   : > { %6325 = vmatprep.subr.mxu1 %v5608_v63 }
 0x21f   : > { %6303 = vmatmul.mubr.msk.f32.gmra.mrb[2].mxu1 %vm2609_vm2, %v7392_v48 }
 0x220   : > { %6305 = vmatprep.mubr.msk.f32.mxu1 %vm2609_vm2, %v7396_v49 }
 0x223   : > { %6306 = vmatmul.mubr.msk.f32.gmra.mrb[4].mxu1 %vm2609_vm2, %v7400_v50 }
 0x224   : > { %6308 = vmatprep.mubr.msk.f32.mxu1 %vm2609_vm2, %v7404_v52 }
 0x227   : > { %6309 = vmatmul.mubr.msk.f32.gmra.mrb[6].mxu1 %vm2609_vm2, %v7478_v1 }
 0x228   : > { %6313 = vmatprep.mubr.msk.f32.mxu1 %vm2609_vm2, %v3289_v0 }
 0x22b   : > { %6314 = vmatmul.mubr.msk.f32.vlgmr.msra.gmra.mrb[8].mxu1 %vm2609_vm2, %v7483_v2 }
 0x22c   : > { %6326 = vmatpush3.msra.mxu1 %v5608_v63  ;;  %6316 = vmatprep.mubr.msk.f32.mxu1 %vm2609_vm2, %v7490_v11 }
 0x22d   : > { %6339 = vmatprep.subr.mxu1 %v5626_v5 }
 0x22f   : > { %6317 = vmatmul.mubr.msk.f32.gmra.mrb[10].mxu1 %vm2609_vm2, %v7494_v14 }
 0x230   : > { %6319 = vmatprep.mubr.msk.f32.mxu1 %vm2609_vm2, %v7498_v20 }
 0x233   : > { %6320 = vmatmul.mubr.msk.f32.gmra.mrb[12].mxu1 %vm2609_vm2, %v7502_v23 }
 0x234   : > { %6322 = vmatprep.mubr.msk.f32.mxu1 %vm2609_vm2, %v7506_v29 }
 0x237   : > { %6323 = vmatmul.mubr.msk.f32.gmra.mrb[14].mxu1 %vm2609_vm2, %v7510_v32 }
 0x238   : > { %6327 = vmatprep.mubr.msk.f32.mxu1 %vm2609_vm2, %v7365_v24 }
 0x23b   : > { %6328 = vmatmul.mubr.msk.f32.vlgmr.msra.gmra.mrb[8].mxu1 %vm2609_vm2, %v7374_v42 }
 0x23c   : > { %6340 = vmatpush3.msra.mxu1 %v5626_v5  ;;  %6330 = vmatprep.mubr.msk.f32.mxu1 %vm2609_vm2, %v7382_v44 }
 0x23d   : > { %6353 = vmatprep.subr.mxu1 %v5635_v38 }
 0x23f   : > { %6331 = vmatmul.mubr.msk.f32.gmra.mrb[10].mxu1 %vm2609_vm2, %v7387_v47 }
 0x240   : > { %6333 = vmatprep.mubr.msk.f32.mxu1 %vm2609_vm2, %v7392_v48 }
 0x243   : > { %6334 = vmatmul.mubr.msk.f32.gmra.mrb[12].mxu1 %vm2609_vm2, %v7396_v49 }
 0x244   : > { %6336 = vmatprep.mubr.msk.f32.mxu1 %vm2609_vm2, %v7400_v50 }
 0x247   : > { %6337 = vmatmul.mubr.msk.f32.gmra.mrb[14].mxu1 %vm2609_vm2, %v7404_v52 }
 0x248   : > { %6341 = vmatprep.mubr.msk.f32.mxu1 %vm2609_vm2, %v7374_v42 }
 0x24b   : > { %6342 = vmatmul.mubr.msk.f32.vlgmr.msra.gmra.mrb[8].mxu1 %vm2609_vm2, %v7382_v44 }
 0x24c   : > { %6354 = vmatpush3.msra.mxu1 %v5635_v38  ;;  %6344 = vmatprep.mubr.msk.f32.mxu1 %vm2609_vm2, %v7387_v47 }
 0x24d   : > { %6367 = vmatprep.subr.mxu1 %v5653_v12 }
 0x24f   : > { %6345 = vmatmul.mubr.msk.f32.gmra.mrb[10].mxu1 %vm2609_vm2, %v7392_v48 }
 0x250   : > { %6347 = vmatprep.mubr.msk.f32.mxu1 %vm2609_vm2, %v7396_v49 }
 0x253   : > { %6348 = vmatmul.mubr.msk.f32.gmra.mrb[12].mxu1 %vm2609_vm2, %v7400_v50 }
 0x254   : > { %6350 = vmatprep.mubr.msk.f32.mxu1 %vm2609_vm2, %v7404_v52 }
 0x257   : > { %6351 = vmatmul.mubr.msk.f32.gmra.mrb[14].mxu1 %vm2609_vm2, %v7478_v1 }
 0x258   : > { %6355 = vmatprep.mubr.msk.f32.mxu1 %vm2609_vm2, %v7483_v2 }
 0x25b   : > { %6356 = vmatmul.mubr.msk.f32.vlgmr.msra.gmra.mrb[8].mxu1 %vm2609_vm2, %v7490_v11 }
 0x25c   : > { %6368 = vmatpush3.msra.mxu1 %v5653_v12  ;;  %6358 = vmatprep.mubr.msk.f32.mxu1 %vm2609_vm2, %v7494_v14 }
 0x25d   : > { %6381 = vmatprep.subr.mxu1 %v5652_v13 }
 0x25f   : > { %6359 = vmatmul.mubr.msk.f32.gmra.mrb[10].mxu1 %vm2609_vm2, %v7498_v20 }
 0x260   : > { %6361 = vmatprep.mubr.msk.f32.mxu1 %vm2609_vm2, %v7502_v23 }
 0x263   : > { %6362 = vmatmul.mubr.msk.f32.gmra.mrb[12].mxu1 %vm2609_vm2, %v7506_v29 }
 0x264   : > { %6364 = vmatprep.mubr.msk.f32.mxu1 %vm2609_vm2, %v7510_v32 }
 0x267   : > { %6365 = vmatmul.mubr.msk.f32.gmra.mrb[14].mxu1 %vm2609_vm2, %v7569_v3 }
 0x268   : > { %6369 = vmatprep.mubr.msk.f32.mxu1 %vm2609_vm2, %v7374_v42 }
 0x26b   : > { %6370 = vmatmul.mubr.msk.f32.vlgmr.msra.gmra.mrb[16].mxu1 %vm2609_vm2, %v7382_v44 }
 0x26c   : > { %6382 = vmatpush3.msra.mxu1 %v5652_v13  ;;  %6372 = vmatprep.mubr.msk.f32.mxu1 %vm2609_vm2, %v7387_v47 }
 0x26d   : > { %6395 = vmatprep.subr.mxu1 %v5670_v4 }
 0x26f   : > { %6373 = vmatmul.mubr.msk.f32.gmra.mrb[18].mxu1 %vm2609_vm2, %v7392_v48 }
 0x270   : > { %6375 = vmatprep.mubr.msk.f32.mxu1 %vm2609_vm2, %v7396_v49 }
 0x273   : > { %6376 = vmatmul.mubr.msk.f32.gmra.mrb[20].mxu1 %vm2609_vm2, %v7400_v50 }
 0x274   : > { %6378 = vmatprep.mubr.msk.f32.mxu1 %vm2609_vm2, %v7404_v52 }
 0x277   : > { %6379 = vmatmul.mubr.msk.f32.gmra.mrb[22].mxu1 %vm2609_vm2, %v7478_v1 }
 0x278   : > { %6383 = vmatprep.mubr.msk.f32.mxu1 %vm2609_vm2, %v7409_v53 }
 0x27b   : > { %6384 = vmatmul.mubr.msk.f32.vlgmr.msra.gmra.mrb[16].mxu1 %vm2609_vm2, %v7416_v55 }
 0x27c   : > { %6396 = vmatpush3.msra.mxu1 %v5670_v4  ;;  %6386 = vmatprep.mubr.msk.f32.mxu1 %vm2609_vm2, %v7420_v56 }
 0x27d   : > { %6409 = vmatprep.subr.mxu1 %v5679_v6 }
 0x27f   : > { %6387 = vmatmul.mubr.msk.f32.gmra.mrb[18].mxu1 %vm2609_vm2, %v7424_v57 }
 0x280   : > { %6389 = vmatprep.mubr.msk.f32.mxu1 %vm2609_vm2, %v7428_v58 }
 0x283   : > { %6390 = vmatmul.mubr.msk.f32.gmra.mrb[20].mxu1 %vm2609_vm2, %v7432_v59 }
 0x284   : > { %6392 = vmatprep.mubr.msk.f32.mxu1 %vm2609_vm2, %v7436_v60 }
 0x287   : > { %6393 = vmatmul.mubr.msk.f32.gmra.mrb[22].mxu1 %vm2609_vm2, %v7457_v62 }
 0x288   : > { %6397 = vmatprep.mubr.msk.f32.mxu1 %vm2609_vm2, %v7416_v55 }
 0x28b   : > { %6398 = vmatmul.mubr.msk.f32.vlgmr.msra.gmra.mrb[16].mxu1 %vm2609_vm2, %v7420_v56 }
 0x28c   : > { %6410 = vmatpush3.msra.mxu1 %v5679_v6  ;;  %6400 = vmatprep.mubr.msk.f32.mxu1 %vm2609_vm2, %v7424_v57 }
 0x28d   : > { %6423 = vmatprep.subr.mxu1 %v5697_v7 }
 0x28f   : > { %6401 = vmatmul.mubr.msk.f32.gmra.mrb[18].mxu1 %vm2609_vm2, %v7428_v58 }
 0x290   : > { %6403 = vmatprep.mubr.msk.f32.mxu1 %vm2609_vm2, %v7432_v59 }
 0x293   : > { %6404 = vmatmul.mubr.msk.f32.gmra.mrb[20].mxu1 %vm2609_vm2, %v7436_v60 }
 0x294   : > { %6406 = vmatprep.mubr.msk.f32.mxu1 %vm2609_vm2, %v7457_v62 }
 0x297   : > { %6407 = vmatmul.mubr.msk.f32.gmra.mrb[22].mxu1 %vm2609_vm2, %v4206_v8 }
 0x298   : > { %6411 = vmatprep.mubr.msk.f32.mxu1 %vm2609_vm2, %v7382_v44 }
 0x29b   : > { %6412 = vmatmul.mubr.msk.f32.vlgmr.msra.gmra.mrb[16].mxu1 %vm2609_vm2, %v7387_v47 }
 0x29c   : > { %6424 = vmatpush3.msra.mxu1 %v5697_v7  ;;  %6414 = vmatprep.mubr.msk.f32.mxu1 %vm2609_vm2, %v7392_v48 }
 0x29d   : > { %6437 = vmatprep.subr.mxu1 %v5696_v9 }
 0x29f   : > { %6415 = vmatmul.mubr.msk.f32.gmra.mrb[18].mxu1 %vm2609_vm2, %v7396_v49 }
 0x2a0   : > { %6417 = vmatprep.mubr.msk.f32.mxu1 %vm2609_vm2, %v7400_v50 }
 0x2a3   : > { %6418 = vmatmul.mubr.msk.f32.gmra.mrb[20].mxu1 %vm2609_vm2, %v7404_v52 }
 0x2a4   : > { %6420 = vmatprep.mubr.msk.f32.mxu1 %vm2609_vm2, %v7478_v1 }
 0x2a7   : > { %6421 = vmatmul.mubr.msk.f32.gmra.mrb[22].mxu1 %vm2609_vm2, %v4353_v10 }
 0x2a8   : > { %6425 = vmatprep.mubr.msk.f32.mxu1 %vm2609_vm2, %v7483_v2 }
 0x2ab   : > { %6426 = vmatmul.mubr.msk.f32.vlgmr.msra.gmra.mrb[24].mxu1 %vm2609_vm2, %v7490_v11 }
 0x2ac   : > { %6438 = vmatpush3.msra.mxu1 %v5696_v9  ;;  %6428 = vmatprep.mubr.msk.f32.mxu1 %vm2609_vm2, %v7494_v14 }
 0x2ad   : > { %6451 = vmatprep.subr.mxu1 %v5714_v15 }
 0x2af   : > { %6429 = vmatmul.mubr.msk.f32.gmra.mrb[26].mxu1 %vm2609_vm2, %v7498_v20 }
 0x2b0   : > { %6431 = vmatprep.mubr.msk.f32.mxu1 %vm2609_vm2, %v7502_v23 }
 0x2b3   : > { %6432 = vmatmul.mubr.msk.f32.gmra.mrb[28].mxu1 %vm2609_vm2, %v7506_v29 }
 0x2b4   : > { %6434 = vmatprep.mubr.msk.f32.mxu1 %vm2609_vm2, %v7510_v32 }
 0x2b7   : > { %6435 = vmatmul.mubr.msk.f32.gmra.mrb[30].mxu1 %vm2609_vm2, %v7569_v3 }
 0x2b8   : > { %6439 = vmatprep.mubr.msk.f32.mxu1 %vm2609_vm2, %v7374_v42 }
 0x2bb   : > { %6440 = vmatmul.mubr.msk.f32.vlgmr.msra.gmra.mrb[24].mxu1 %vm2609_vm2, %v7382_v44 }
 0x2bc   : > { %6452 = vmatpush3.msra.mxu1 %v5714_v15  ;;  %6442 = vmatprep.mubr.msk.f32.mxu1 %vm2609_vm2, %v7387_v47 }
 0x2bd   : > { %6465 = vmatprep.subr.mxu1 %v5723_v16 }
 0x2bf   : > { %6443 = vmatmul.mubr.msk.f32.gmra.mrb[26].mxu1 %vm2609_vm2, %v7392_v48 }
 0x2c0   : > { %6445 = vmatprep.mubr.msk.f32.mxu1 %vm2609_vm2, %v7396_v49 }
 0x2c3   : > { %6446 = vmatmul.mubr.msk.f32.gmra.mrb[28].mxu1 %vm2609_vm2, %v7400_v50 }
 0x2c4   : > { %6448 = vmatprep.mubr.msk.f32.mxu1 %vm2609_vm2, %v7404_v52 }
 0x2c7   : > { %6449 = vmatmul.mubr.msk.f32.gmra.mrb[30].mxu1 %vm2609_vm2, %v7478_v1 }
 0x2c8   : > { %6453 = vmatprep.mubr.msk.f32.mxu1 %vm2609_vm2, %v7382_v44 }
 0x2cb   : > { %6454 = vmatmul.mubr.msk.f32.vlgmr.msra.gmra.mrb[24].mxu1 %vm2609_vm2, %v7387_v47 }
 0x2cc   : > { %6466 = vmatpush3.msra.mxu1 %v5723_v16  ;;  %6456 = vmatprep.mubr.msk.f32.mxu1 %vm2609_vm2, %v7392_v48 }
 0x2cf   : > { %6457 = vmatmul.mubr.msk.f32.gmra.mrb[26].mxu1 %vm2609_vm2, %v7396_v49 }
 0x2d0   : > { %6459 = vmatprep.mubr.msk.f32.mxu1 %vm2609_vm2, %v7400_v50 }
 0x2d3   : > { %6460 = vmatmul.mubr.msk.f32.gmra.mrb[28].mxu1 %vm2609_vm2, %v7404_v52 }
 0x2d4   : > { %6462 = vmatprep.mubr.msk.f32.mxu1 %vm2609_vm2, %v7478_v1 }
 0x2d7   : > { %6463 = vmatmul.mubr.msk.f32.gmra.mrb[30].mxu1 %vm2609_vm2, %v4353_v10 }
 0x2d8   : > { %6467 = vmatprep.mubr.msk.f32.mxu1 %vm2609_vm2, %v7490_v11 }
 0x2db   : > { %6468 = vmatmul.mubr.msk.f32.vlgmr.msra.gmra.mrb[24].mxu1 %vm2609_vm2, %v7494_v14 }
 0x2dc   : > { %6470 = vmatprep.mubr.msk.f32.mxu1 %vm2609_vm2, %v7498_v20 }
 0x2df   : > { %6471 = vmatmul.mubr.msk.f32.gmra.mrb[26].mxu1 %vm2609_vm2, %v7502_v23 }
 0x2e0   : > { %6473 = vmatprep.mubr.msk.f32.mxu1 %vm2609_vm2, %v7506_v29 }
 0x2e3   : > { %6474 = vmatmul.mubr.msk.f32.gmra.mrb[28].mxu1 %vm2609_vm2, %v7510_v32 }
 0x2e4   : > { %6476 = vmatprep.mubr.msk.f32.mxu1 %vm2609_vm2, %v7569_v3 }
 0x2e7   : > { %6477 = vmatmul.mubr.msk.f32.gmra.mrb[30].mxu1 %vm2609_vm2, %v4994_v17 }
 0x2ee   : > { %v6301_v18 = vpop.f32.mrb[0].mxu1 }
 0x2ef   : > { %6721 = vtanh.f32 %v6301_v18  ;;  %v3164_v19 = vpop.f32.mrb[1].mxu1 }
 0x2f0   : > { %6723 = vtanh.f32 %v3164_v19 }
 0x2f2   : > { %v6304_v21 = vpop.f32.mrb[2].mxu1 }
 0x2f3   : > { %6725 = vtanh.f32 %v6304_v21  ;;  %v3174_v22 = vpop.f32.mrb[3].mxu1 }
 0x2f4   : > { %6727 = vtanh.f32 %v3174_v22 }
 0x2f6   : > { %v6307_v24 = vpop.f32.mrb[4].mxu1 }
 0x2f7   : > { %6729 = vtanh.f32 %v6307_v24  ;;  %v3184_v25 = vpop.f32.mrb[5].mxu1 }
 0x2f8   : > { %6731 = vtanh.f32 %v3184_v25 }
 0x2f9   : > { %v6722_v26 = vpop.eup %6721 }
 0x2fa   : > { %v6724_v27 = vpop.eup %6723  ;;  %3220 = vst.msk [vmem:[%s7719_s14 + $0x8] sm:$0xff] %vm229_vm1, %v6722_v26  ;;  %v3228_v28 = vsel %vm229_vm1, %v6722_v26, 0.0  ;;  %v3250_v30 = vmul.f32 %v6722_v26, %v6722_v26  ;;  %v6310_v31 = vpop.f32.mrb[6].mxu1 }
 0x2fb   : > { %3219 = vst.msk [vmem:[%s7719_s14] sm:$0xff] %vm229_vm1, %v6724_v27  ;;  %v3227_v33 = vsel %vm229_vm1, %v6724_v27, 0.0  ;;  %v3249_v34 = vmul.f32 %v6724_v27, %v6724_v27  ;;  %6733 = vtanh.f32 %v6310_v31  ;;  %v3194_v35 = vpop.f32.mrb[7].mxu1 }
 0x2fc   : > { %v3258_v36 = vsel %vm229_vm1, %v3250_v30, 0.0  ;;  %v3229_v37 = vadd.f32 %v3228_v28, %v3227_v33  ;;  %6735 = vtanh.f32 %v3194_v35 }
 0x2fd   : > { %v6726_v39 = vpop.eup %6725  ;;  %v3257_v40 = vsel %vm229_vm1, %v3249_v34, 0.0 }
 0x2fe   : > { %v6728_v41 = vpop.eup %6727  ;;  %v3259_v42 = vadd.f32 %v3258_v36, %v3257_v40  ;;  %3222 = vst.msk [vmem:[%s7719_s14 + $0x18] sm:$0xff] %vm229_vm1, %v6726_v39  ;;  %v3252_v43 = vmul.f32 %v6726_v39, %v6726_v39  ;;  %v3232_v48 = vsel %vm229_vm1, %v6726_v39, 0.0 }
 0x2ff   : > { %3221 = vst.msk [vmem:[%s7719_s14 + $0x10] sm:$0xff] %vm229_vm1, %v6728_v41  ;;  %v3230_v44 = vsel %vm229_vm1, %v6728_v41, 0.0  ;;  %v3251_v45 = vmul.f32 %v6728_v41, %v6728_v41 }
 0x300   : > { %v3231_v46 = vadd.f32 %v3230_v44, %v3229_v37  ;;  %v3262_v53 = vsel %vm229_vm1, %v3252_v43, 0.0 }
 0x301   : > { %v6730_v47 = vpop.eup %6729  ;;  %v3260_v49 = vsel %vm229_vm1, %v3251_v45, 0.0 }
 0x302   : > { %v6732_v50 = vpop.eup %6731  ;;  %v3261_v51 = vadd.f32 %v3260_v49, %v3259_v42  ;;  %3224 = vst.msk [vmem:[%s7719_s14 + $0x28] sm:$0xff] %vm229_vm1, %v6730_v47  ;;  %v3233_v52 = vadd.f32 %v3232_v48, %v3231_v46  ;;  %v3254_v54 = vmul.f32 %v6730_v47, %v6730_v47  ;;  %v3236_v60 = vsel %vm229_vm1, %v6730_v47, 0.0 }
 0x303   : > { %3223 = vst.msk [vmem:[%s7719_s14 + $0x20] sm:$0xff] %vm229_vm1, %v6732_v50  ;;  %v3234_v55 = vsel %vm229_vm1, %v6732_v50, 0.0  ;;  %v3253_v56 = vmul.f32 %v6732_v50, %v6732_v50 }
 0x304   : > { %v3235_v57 = vadd.f32 %v3234_v55, %v3233_v52  ;;  %v3263_v58 = vadd.f32 %v3262_v53, %v3261_v51  ;;  %v3266_v1 = vsel %vm229_vm1, %v3254_v54, 0.0 }
 0x305   : > { %v6734_v59 = vpop.eup %6733  ;;  %v3264_v61 = vsel %vm229_vm1, %v3253_v56, 0.0 }
 0x306   : > { %v6736_v62 = vpop.eup %6735  ;;  %v3265_v63 = vadd.f32 %v3264_v61, %v3263_v58  ;;  %3226 = vst.msk [vmem:[%s7719_s14 + $0x38] sm:$0xff] %vm229_vm1, %v6734_v59  ;;  %v3237_v0 = vadd.f32 %v3236_v60, %v3235_v57  ;;  %v3256_v2 = vmul.f32 %v6734_v59, %v6734_v59  ;;  %v3240_v23 = vsel %vm229_vm1, %v6734_v59, 0.0 }
 0x307   : > { %3225 = vst.msk [vmem:[%s7719_s14 + $0x30] sm:$0xff] %vm229_vm1, %v6736_v62  ;;  %v3238_v5 = vsel %vm229_vm1, %v6736_v62, 0.0  ;;  %v3255_v11 = vmul.f32 %v6736_v62, %v6736_v62 }
 0x308   : > { %v3239_v14 = vadd.f32 %v3238_v5, %v3237_v0  ;;  %v3267_v20 = vadd.f32 %v3266_v1, %v3265_v63  ;;  %v3270_v12 = vsel %vm229_vm1, %v3256_v2, 0.0 }
 0x309   : > { %v3268_v29 = vsel %vm229_vm1, %v3255_v11, 0.0 }
 0x30a   : > { %v3241_v32 = vadd.f32 %v3240_v23, %v3239_v14  ;;  %v3269_v38 = vadd.f32 %v3268_v29, %v3267_v20 }
 0x30c   : > { %v7753_v13 = vadd.f32 %v3270_v12, %v3269_v38  ;;  %v3242_v41 = vrot.slane %v3241_v32, 4 }
 0x30e   : > { %v3272_v48 = vrot.slane %v7753_v13, 4  ;;  %v3243_v55 = vadd.f32 %v3242_v41, %v3241_v32 }
 0x310   : > { %v3273_v62 = vadd.f32 %v3272_v48, %v7753_v13  ;;  %v3244_v5 = vrot.slane %v3243_v55, 2 }
 0x312   : > { %v3274_v23 = vrot.slane %v3273_v62, 2  ;;  %v3245_v38 = vadd.f32 %v3244_v5, %v3243_v55 }
 0x32e   : > { %v6357_v3 = vpop.f32.mrb[8].mxu1 }
 0x32f   : > { %6737 = vtanh.f32 %v6357_v3  ;;  %v3804_v4 = vpop.f32.mrb[9].mxu1 }
 0x330   : > { %6739 = vtanh.f32 %v3804_v4  ;;  %v3275_v4 = vadd.f32 %v3274_v23, %v3273_v62 }
 0x332   : > { %v6360_v6 = vpop.f32.mrb[10].mxu1 }
 0x333   : > { %6741 = vtanh.f32 %v6360_v6  ;;  %v3814_v7 = vpop.f32.mrb[11].mxu1 }
 0x334   : > { %6743 = vtanh.f32 %v3814_v7  ;;  %v3246_v7 = vrot.slane %v3245_v38, 1 }
 0x336   : > { %v6363_v8 = vpop.f32.mrb[12].mxu1 }
 0x337   : > { %6745 = vtanh.f32 %v6363_v8  ;;  %v3824_v9 = vpop.f32.mrb[13].mxu1 }
 0x338   : > { %6747 = vtanh.f32 %v3824_v9 }
 0x339   : > { %v6738_v10 = vpop.eup %6737 }
 0x33a   : > { %v6740_v15 = vpop.eup %6739  ;;  %5645 = vst.msk [vmem:[%s7719_s14 + $0x48] sm:$0xff] %vm229_vm1, %v6738_v10  ;;  %v3869_v16 = vsel %vm229_vm1, %v6738_v10, 0.0  ;;  %v3891_v17 = vmul.f32 %v6738_v10, %v6738_v10  ;;  %v6366_v18 = vpop.f32.mrb[14].mxu1  ;;  %v3276_v10 = vrot.slane %v3275_v4, 1 }
 0x33b   : > { %5644 = vst.msk [vmem:[%s7719_s14 + $0x40] sm:$0xff] %vm229_vm1, %v6740_v15  ;;  %v3868_v19 = vsel %vm229_vm1, %v6740_v15, 0.0  ;;  %v3890_v21 = vmul.f32 %v6740_v15, %v6740_v15  ;;  %6749 = vtanh.f32 %v6366_v18  ;;  %v3834_v22 = vpop.f32.mrb[15].mxu1 }
 0x33c   : > { %v3899_v24 = vsel %vm229_vm1, %v3891_v17, 0.0  ;;  %v3870_v25 = vadd.f32 %v3869_v16, %v3868_v19  ;;  %6751 = vtanh.f32 %v3834_v22  ;;  %v3247_v17 = vadd.f32 %v3246_v7, %v3245_v38 }
 0x33d   : > { %v6742_v26 = vpop.eup %6741  ;;  %v3898_v27 = vsel %vm229_vm1, %v3890_v21, 0.0  ;;  %v3277_v21 = vadd.f32 %v3276_v10, %v3275_v4 }
 0x33e   : > { %v6744_v28 = vpop.eup %6743  ;;  %v3900_v30 = vadd.f32 %v3899_v24, %v3898_v27  ;;  %5647 = vst.msk [vmem:[%s7719_s14 + $0x58] sm:$0xff] %vm229_vm1, %v6742_v26  ;;  %v3893_v31 = vmul.f32 %v6742_v26, %v6742_v26  ;;  %v3873_v37 = vsel %vm229_vm1, %v6742_v26, 0.0 }
 0x33f   : > { %5646 = vst.msk [vmem:[%s7719_s14 + $0x50] sm:$0xff] %vm229_vm1, %v6744_v28  ;;  %v3871_v33 = vsel %vm229_vm1, %v6744_v28, 0.0  ;;  %v3892_v34 = vmul.f32 %v6744_v28, %v6744_v28 }
 0x340   : > { %v3872_v35 = vadd.f32 %v3871_v33, %v3870_v25  ;;  %v3903_v44 = vsel %vm229_vm1, %v3893_v31, 0.0 }
 0x341   : > { %v6746_v36 = vpop.eup %6745  ;;  %v3901_v39 = vsel %vm229_vm1, %v3892_v34, 0.0 }
 0x342   : > { %v6748_v40 = vpop.eup %6747  ;;  %v3902_v42 = vadd.f32 %v3901_v39, %v3900_v30  ;;  %5649 = vst.msk [vmem:[%s7719_s14 + $0x68] sm:$0xff] %vm229_vm1, %v6746_v36  ;;  %v3874_v43 = vadd.f32 %v3873_v37, %v3872_v35  ;;  %v3895_v45 = vmul.f32 %v6746_v36, %v6746_v36  ;;  %v3877_v52 = vsel %vm229_vm1, %v6746_v36, 0.0 }
 0x343   : > { %5648 = vst.msk [vmem:[%s7719_s14 + $0x60] sm:$0xff] %vm229_vm1, %v6748_v40  ;;  %v3875_v46 = vsel %vm229_vm1, %v6748_v40, 0.0  ;;  %v3894_v47 = vmul.f32 %v6748_v40, %v6748_v40 }
 0x344   : > { %v3876_v49 = vadd.f32 %v3875_v46, %v3874_v43  ;;  %v3904_v50 = vadd.f32 %v3903_v44, %v3902_v42  ;;  %v3907_v58 = vsel %vm229_vm1, %v3895_v45, 0.0 }
 0x345   : > { %v6750_v51 = vpop.eup %6749  ;;  %v3905_v53 = vsel %vm229_vm1, %v3894_v47, 0.0 }
 0x346   : > { %v6752_v54 = vpop.eup %6751  ;;  %v3906_v56 = vadd.f32 %v3905_v53, %v3904_v50  ;;  %5651 = vst.msk [vmem:[%s7719_s14 + $0x78] sm:$0xff] %vm229_vm1, %v6750_v51  ;;  %v3878_v57 = vadd.f32 %v3877_v52, %v3876_v49  ;;  %v3897_v59 = vmul.f32 %v6750_v51, %v6750_v51  ;;  %v3881_v1 = vsel %vm229_vm1, %v6750_v51, 0.0 }
 0x347   : > { %5650 = vst.msk [vmem:[%s7719_s14 + $0x70] sm:$0xff] %vm229_vm1, %v6752_v54  ;;  %v3879_v60 = vsel %vm229_vm1, %v6752_v54, 0.0  ;;  %v3896_v61 = vmul.f32 %v6752_v54, %v6752_v54 }
 0x348   : > { %v3880_v63 = vadd.f32 %v3879_v60, %v3878_v57  ;;  %v3908_v0 = vadd.f32 %v3907_v58, %v3906_v56  ;;  %v3911_v20 = vsel %vm229_vm1, %v3897_v59, 0.0 }
 0x349   : > { %v3909_v2 = vsel %vm229_vm1, %v3896_v61, 0.0 }
 0x34a   : > { %v3882_v11 = vadd.f32 %v3881_v1, %v3880_v63  ;;  %v3910_v14 = vadd.f32 %v3909_v2, %v3908_v0 }
 0x34c   : > { %v3883_v29 = vrot.slane %v3882_v11, 4  ;;  %v3912_v32 = vadd.f32 %v3911_v20, %v3910_v14 }
 0x34e   : > { %v3884_v12 = vadd.f32 %v3883_v29, %v3882_v11  ;;  %v3913_v3 = vrot.slane %v3912_v32, 4 }
 0x350   : > { %v3885_v6 = vrot.slane %v3884_v12, 2  ;;  %v3914_v13 = vadd.f32 %v3913_v3, %v3912_v32 }
 0x352   : > { %v3886_v8 = vadd.f32 %v3885_v6, %v3884_v12  ;;  %v3915_v9 = vrot.slane %v3914_v13, 2 }
 0x354   : > { %v3887_v15 = vrot.slane %v3886_v8, 1  ;;  %v3916_v16 = vadd.f32 %v3915_v9, %v3914_v13 }
 0x356   : > { %v3888_v18 = vadd.f32 %v3887_v15, %v3886_v8  ;;  %v3917_v19 = vrot.slane %v3916_v16, 1 }
 0x358   : > { %v7789_v22 = vadd.f32 %v3888_v18, %v3247_v17  ;;  %v3918_v24 = vadd.f32 %v3917_v19, %v3916_v16 }
 0x35a   : > { %v7791_v25 = vadd.f32 %v3918_v24, %v3277_v21 }
 0x36e   : > { %v6413_v26 = vpop.f32.mrb[16].mxu1 }
 0x36f   : > { %6753 = vtanh.f32 %v6413_v26  ;;  %v4446_v27 = vpop.f32.mrb[17].mxu1 }
 0x370   : > { %6755 = vtanh.f32 %v4446_v27 }
 0x372   : > { %v6416_v28 = vpop.f32.mrb[18].mxu1 }
 0x373   : > { %6757 = vtanh.f32 %v6416_v28  ;;  %v4456_v30 = vpop.f32.mrb[19].mxu1 }
 0x374   : > { %6759 = vtanh.f32 %v4456_v30 }
 0x376   : > { %v6419_v31 = vpop.f32.mrb[20].mxu1 }
 0x377   : > { %6761 = vtanh.f32 %v6419_v31  ;;  %v4466_v33 = vpop.f32.mrb[21].mxu1 }
 0x378   : > { %6763 = vtanh.f32 %v4466_v33 }
 0x379   : > { %v6754_v34 = vpop.eup %6753 }
 0x37a   : > { %v6756_v35 = vpop.eup %6755  ;;  %5689 = vst.msk [vmem:[%s7719_s14 + $0x88] sm:$0xff] %vm229_vm1, %v6754_v34  ;;  %v4511_v36 = vsel %vm229_vm1, %v6754_v34, 0.0  ;;  %v4533_v37 = vmul.f32 %v6754_v34, %v6754_v34  ;;  %v6422_v39 = vpop.f32.mrb[22].mxu1 }
 0x37b   : > { %5688 = vst.msk [vmem:[%s7719_s14 + $0x80] sm:$0xff] %vm229_vm1, %v6756_v35  ;;  %v4510_v40 = vsel %vm229_vm1, %v6756_v35, 0.0  ;;  %v4532_v41 = vmul.f32 %v6756_v35, %v6756_v35  ;;  %6765 = vtanh.f32 %v6422_v39  ;;  %v4476_v42 = vpop.f32.mrb[23].mxu1 }
 0x37c   : > { %v4541_v43 = vsel %vm229_vm1, %v4533_v37, 0.0  ;;  %v4512_v44 = vadd.f32 %v4511_v36, %v4510_v40  ;;  %6767 = vtanh.f32 %v4476_v42 }
 0x37d   : > { %v6758_v45 = vpop.eup %6757  ;;  %v4540_v46 = vsel %vm229_vm1, %v4532_v41, 0.0 }
 0x37e   : > { %v6760_v47 = vpop.eup %6759  ;;  %v4542_v48 = vadd.f32 %v4541_v43, %v4540_v46  ;;  %5691 = vst.msk [vmem:[%s7719_s14 + $0x98] sm:$0xff] %vm229_vm1, %v6758_v45  ;;  %v4535_v49 = vmul.f32 %v6758_v45, %v6758_v45  ;;  %v4515_v54 = vsel %vm229_vm1, %v6758_v45, 0.0 }
 0x37f   : > { %5690 = vst.msk [vmem:[%s7719_s14 + $0x90] sm:$0xff] %vm229_vm1, %v6760_v47  ;;  %v4513_v50 = vsel %vm229_vm1, %v6760_v47, 0.0  ;;  %v4534_v51 = vmul.f32 %v6760_v47, %v6760_v47 }
 0x380   : > { %v4514_v52 = vadd.f32 %v4513_v50, %v4512_v44  ;;  %v4545_v59 = vsel %vm229_vm1, %v4535_v49, 0.0 }
 0x381   : > { %v6762_v53 = vpop.eup %6761  ;;  %v4543_v55 = vsel %vm229_vm1, %v4534_v51, 0.0 }
 0x382   : > { %v6764_v56 = vpop.eup %6763  ;;  %v4544_v57 = vadd.f32 %v4543_v55, %v4542_v48  ;;  %5693 = vst.msk [vmem:[%s7719_s14 + $0xa8] sm:$0xff] %vm229_vm1, %v6762_v53  ;;  %v4516_v58 = vadd.f32 %v4515_v54, %v4514_v52  ;;  %v4537_v60 = vmul.f32 %v6762_v53, %v6762_v53  ;;  %v4519_v2 = vsel %vm229_vm1, %v6762_v53, 0.0 }
 0x383   : > { %5692 = vst.msk [vmem:[%s7719_s14 + $0xa0] sm:$0xff] %vm229_vm1, %v6764_v56  ;;  %v4517_v61 = vsel %vm229_vm1, %v6764_v56, 0.0  ;;  %v4536_v62 = vmul.f32 %v6764_v56, %v6764_v56 }
 0x384   : > { %v4518_v63 = vadd.f32 %v4517_v61, %v4516_v58  ;;  %v4546_v0 = vadd.f32 %v4545_v59, %v4544_v57  ;;  %v4549_v23 = vsel %vm229_vm1, %v4537_v60, 0.0 }
 0x385   : > { %v6766_v1 = vpop.eup %6765  ;;  %v4547_v5 = vsel %vm229_vm1, %v4536_v62, 0.0 }
 0x386   : > { %v6768_v11 = vpop.eup %6767  ;;  %v4548_v14 = vadd.f32 %v4547_v5, %v4546_v0  ;;  %5695 = vst.msk [vmem:[%s7719_s14 + $0xb8] sm:$0xff] %vm229_vm1, %v6766_v1  ;;  %v4520_v20 = vadd.f32 %v4519_v2, %v4518_v63  ;;  %v4539_v29 = vmul.f32 %v6766_v1, %v6766_v1  ;;  %v4523_v4 = vsel %vm229_vm1, %v6766_v1, 0.0 }
 0x387   : > { %5694 = vst.msk [vmem:[%s7719_s14 + $0xb0] sm:$0xff] %vm229_vm1, %v6768_v11  ;;  %v4521_v32 = vsel %vm229_vm1, %v6768_v11, 0.0  ;;  %v4538_v38 = vmul.f32 %v6768_v11, %v6768_v11 }
 0x388   : > { %v4522_v12 = vadd.f32 %v4521_v32, %v4520_v20  ;;  %v4550_v3 = vadd.f32 %v4549_v23, %v4548_v14  ;;  %v4553_v8 = vsel %vm229_vm1, %v4539_v29, 0.0 }
 0x389   : > { %v4551_v6 = vsel %vm229_vm1, %v4538_v38, 0.0 }
 0x38a   : > { %v4524_v13 = vadd.f32 %v4523_v4, %v4522_v12  ;;  %v4552_v7 = vadd.f32 %v4551_v6, %v4550_v3 }
 0x38c   : > { %v4525_v9 = vrot.slane %v4524_v13, 4  ;;  %v4554_v10 = vadd.f32 %v4553_v8, %v4552_v7 }
 0x38e   : > { %v4526_v15 = vadd.f32 %v4525_v9, %v4524_v13  ;;  %v4555_v16 = vrot.slane %v4554_v10, 4 }
 0x390   : > { %v4527_v17 = vrot.slane %v4526_v15, 2  ;;  %v4556_v18 = vadd.f32 %v4555_v16, %v4554_v10 }
 0x392   : > { %v4528_v19 = vadd.f32 %v4527_v17, %v4526_v15  ;;  %v4557_v21 = vrot.slane %v4556_v18, 2 }
 0x394   : > { %v4529_v24 = vrot.slane %v4528_v19, 1  ;;  %v4558_v26 = vadd.f32 %v4557_v21, %v4556_v18 }
 0x396   : > { %v4530_v27 = vadd.f32 %v4529_v24, %v4528_v19  ;;  %v4559_v28 = vrot.slane %v4558_v26, 1 }
 0x398   : > { %v7826_v30 = vadd.f32 %v4530_v27, %v7789_v22  ;;  %v4560_v31 = vadd.f32 %v4559_v28, %v4558_v26 }
 0x39a   : > { %v7829_v33 = vadd.f32 %v4560_v31, %v7791_v25 }
 0x3ae   : > { %v6469_v34 = vpop.f32.mrb[24].mxu1 }
 0x3af   : > { %6769 = vtanh.f32 %v6469_v34  ;;  %v5087_v35 = vpop.f32.mrb[25].mxu1 }
 0x3b0   : > { %6771 = vtanh.f32 %v5087_v35 }
 0x3b2   : > { %v6472_v36 = vpop.f32.mrb[26].mxu1 }
 0x3b3   : > { %6773 = vtanh.f32 %v6472_v36  ;;  %v5097_v37 = vpop.f32.mrb[27].mxu1 }
 0x3b4   : > { %6775 = vtanh.f32 %v5097_v37 }
 0x3b6   : > { %v6475_v39 = vpop.f32.mrb[28].mxu1 }
 0x3b7   : > { %6777 = vtanh.f32 %v6475_v39  ;;  %v5107_v40 = vpop.f32.mrb[29].mxu1 }
 0x3b8   : > { %6779 = vtanh.f32 %v5107_v40 }
 0x3b9   : > { %v6770_v22 = vpop.eup %6769 }
 0x3ba   : > { %v6772_v41 = vpop.eup %6771  ;;  %5733 = vst.msk [vmem:[%s7719_s14 + $0xc8] sm:$0xff] %vm229_vm1, %v6770_v22  ;;  %v5152_v25 = vsel %vm229_vm1, %v6770_v22, 0.0  ;;  %v5174_v42 = vmul.f32 %v6770_v22, %v6770_v22  ;;  %v6478_v43 = vpop.f32.mrb[30].mxu1 }
 0x3bb   : > { %5732 = vst.msk [vmem:[%s7719_s14 + $0xc0] sm:$0xff] %vm229_vm1, %v6772_v41  ;;  %v5151_v44 = vsel %vm229_vm1, %v6772_v41, 0.0  ;;  %v5173_v45 = vmul.f32 %v6772_v41, %v6772_v41  ;;  %6781 = vtanh.f32 %v6478_v43  ;;  %v5117_v46 = vpop.f32.mrb[31].mxu1 }
 0x3bc   : > { %v5182_v47 = vsel %vm229_vm1, %v5174_v42, 0.0  ;;  %v5153_v48 = vadd.f32 %v5152_v25, %v5151_v44  ;;  %6783 = vtanh.f32 %v5117_v46 }
 0x3bd   : > { %v6774_v49 = vpop.eup %6773  ;;  %v5181_v50 = vsel %vm229_vm1, %v5173_v45, 0.0 }
 0x3be   : > { %v6776_v51 = vpop.eup %6775  ;;  %v5183_v52 = vadd.f32 %v5182_v47, %v5181_v50  ;;  %5735 = vst.msk [vmem:[%s7719_s14 + $0xd8] sm:$0xff] %vm229_vm1, %v6774_v49  ;;  %v5176_v53 = vmul.f32 %v6774_v49, %v6774_v49  ;;  %v5156_v58 = vsel %vm229_vm1, %v6774_v49, 0.0 }
 0x3bf   : > { %5734 = vst.msk [vmem:[%s7719_s14 + $0xd0] sm:$0xff] %vm229_vm1, %v6776_v51  ;;  %v5154_v54 = vsel %vm229_vm1, %v6776_v51, 0.0  ;;  %v5175_v55 = vmul.f32 %v6776_v51, %v6776_v51 }
 0x3c0   : > { %v5155_v56 = vadd.f32 %v5154_v54, %v5153_v48  ;;  %v5186_v63 = vsel %vm229_vm1, %v5176_v53, 0.0 }
 0x3c1   : > { %v6778_v57 = vpop.eup %6777  ;;  %v5184_v59 = vsel %vm229_vm1, %v5175_v55, 0.0 }
 0x3c2   : > { %v6780_v60 = vpop.eup %6779  ;;  %v5185_v61 = vadd.f32 %v5184_v59, %v5183_v52  ;;  %5737 = vst.msk [vmem:[%s7719_s14 + $0xe8] sm:$0xff] %vm229_vm1, %v6778_v57  ;;  %v5157_v62 = vadd.f32 %v5156_v58, %v5155_v56  ;;  %v5178_v0 = vmul.f32 %v6778_v57, %v6778_v57  ;;  %v5160_v20 = vsel %vm229_vm1, %v6778_v57, 0.0 }
 0x3c3   : > { %5736 = vst.msk [vmem:[%s7719_s14 + $0xe0] sm:$0xff] %vm229_vm1, %v6780_v60  ;;  %v5158_v1 = vsel %vm229_vm1, %v6780_v60, 0.0  ;;  %v5177_v2 = vmul.f32 %v6780_v60, %v6780_v60 }
 0x3c4   : > { %v5159_v5 = vadd.f32 %v5158_v1, %v5157_v62  ;;  %v5187_v11 = vadd.f32 %v5186_v63, %v5185_v61  ;;  %v5190_v12 = vsel %vm229_vm1, %v5178_v0, 0.0 }
 0x3c5   : > { %v6782_v14 = vpop.eup %6781  ;;  %v5188_v23 = vsel %vm229_vm1, %v5177_v2, 0.0 }
 0x3c6   : > { %v6784_v29 = vpop.eup %6783  ;;  %v5189_v32 = vadd.f32 %v5188_v23, %v5187_v11  ;;  %5739 = vst.msk [vmem:[%s7719_s14 + $0xf8] sm:$0xff] %vm229_vm1, %v6782_v14  ;;  %v5161_v38 = vadd.f32 %v5160_v20, %v5159_v5  ;;  %v5180_v3 = vmul.f32 %v6782_v14, %v6782_v14  ;;  %v5164_v8 = vsel %vm229_vm1, %v6782_v14, 0.0 }
 0x3c7   : > { %5738 = vst.msk [vmem:[%s7719_s14 + $0xf0] sm:$0xff] %vm229_vm1, %v6784_v29  ;;  %v5162_v4 = vsel %vm229_vm1, %v6784_v29, 0.0  ;;  %v5179_v6 = vmul.f32 %v6784_v29, %v6784_v29 }
 0x3c8   : > { %v5163_v13 = vadd.f32 %v5162_v4, %v5161_v38  ;;  %v5191_v7 = vadd.f32 %v5190_v12, %v5189_v32  ;;  %v5194_v16 = vsel %vm229_vm1, %v5180_v3, 0.0 }
 0x3c9   : > { %v5192_v9 = vsel %vm229_vm1, %v5179_v6, 0.0 }
 0x3ca   : > { %v5165_v10 = vadd.f32 %v5164_v8, %v5163_v13  ;;  %v5193_v15 = vadd.f32 %v5192_v9, %v5191_v7 }
 0x3cc   : > { %v5166_v17 = vrot.slane %v5165_v10, 4  ;;  %v5195_v18 = vadd.f32 %v5194_v16, %v5193_v15 }
 0x3ce   : > { %v5167_v19 = vadd.f32 %v5166_v17, %v5165_v10  ;;  %v5196_v21 = vrot.slane %v5195_v18, 4 }
 0x3d0   : > { %v5168_v24 = vrot.slane %v5167_v19, 2  ;;  %v5197_v26 = vadd.f32 %v5196_v21, %v5195_v18 }
 0x3d2   : > { %v5169_v27 = vadd.f32 %v5168_v24, %v5167_v19  ;;  %v5198_v28 = vrot.slane %v5197_v26, 2 }
 0x3d4   : > { %v5170_v31 = vrot.slane %v5169_v27, 1  ;;  %v5199_v34 = vadd.f32 %v5198_v28, %v5197_v26 }
 0x3d6   : > { %v5171_v35 = vadd.f32 %v5170_v31, %v5169_v27  ;;  %v5200_v36 = vrot.slane %v5199_v34, 1 }
 0x3d8   : > { %v5172_v37 = vadd.f32 %v5171_v35, %v7826_v30  ;;  %v5201_v39 = vadd.f32 %v5200_v36, %v5199_v34 }
 0x3da   : > { %v5202_v40 = vadd.f32 %v5201_v39, %v7829_v33 }
 0x3dc   : > { %v5204_v22 = vsel %vm5203_vm4, %v5172_v37, %v5202_v40 }
 0x3dd   : > { %5206 = vst.msk [vmem:[%s208_s20] sm:$0x3] %vm5205_vm5, %v5204_v22 }
 0x3de PF: > { %s15_s15 = sadd.s32 1, %s6791_s15  }
 0x3df   : > { %p12_p4 = scmp.ge.s32.totalorder %s15_s15, 4  }
 0x3e1   :  { %14 = sbr.rel (!%p12_p4) target bundleno = 1 (0x1), region = 116 }

</bundles_post_ra>
